<compile_context>
chip_gen: v7x
topology: tpu7x:2x2x1
jax: 0.10.0
libtpu: 0.0.40
codegen_flags: <defaults>
</compile_context>

<pallas_src>
import functools
import math

import jax
import jax.numpy as jnp
from jax.experimental import pallas as pl
from jax.experimental.pallas import tpu as pltpu


_VMEM = pl.BlockSpec(memory_space=pltpu.MemorySpace.VMEM)


# ------------------------------ fused kernel --------------------------------

def _encoder_kernel(emb_ref, mask_ref, eg_ref, eb_ref,
                    wqkv_ref, bqkv_ref, wo_ref, bo_ref,
                    ln1g_ref, ln1b_ref, w1_ref, b1_ref,
                    w2_ref, b2_ref, ln2g_ref, ln2b_ref,
                    o_ref, *, num_layers, num_heads, head_dim, B, S, eps):
    H = num_heads * head_dim

    def layernorm(x, g, b):
        mean = jnp.mean(x, axis=-1, keepdims=True)
        c = x - mean
        var = jnp.mean(c * c, axis=-1, keepdims=True)
        return c * jax.lax.rsqrt(var + eps) * g + b

    def gelu(y):
        # tanh-approximate GELU (original BERT formulation).
        return 0.5 * y * (1.0 + jnp.tanh(
            0.7978845608028654 * (y + 0.044715 * y * y * y)))

    # Embedding LayerNorm (no residual).
    x = layernorm(emb_ref[...], eg_ref[...], eb_ref[...])          # (B*S, H)

    # Additive mask bias computed in-kernel: (B, S).
    bias = (1.0 - mask_ref[...]) * -10000.0

    for l in range(num_layers):
        # Fused QKV projection: 1/sqrt(head_dim) already folded into wq/bq.
        qkv = jnp.dot(x, wqkv_ref[l],
                      preferred_element_type=jnp.float32) + bqkv_ref[l]
        q = qkv[:, 0:H]
        k = qkv[:, H:2 * H]
        v = qkv[:, 2 * H:3 * H]

        # Per-(batch, head) attention, fully unrolled; head split/merge done
        # with static slices + concatenation inside VMEM (no XLA transposes).
        batch_rows = []
        for b in range(B):
            bias_b = bias[b:b + 1, :]                              # (1, S)
            head_cols = []
            for h in range(num_heads):
                r0 = b * S
                c0 = h * head_dim
                q_bh = q[r0:r0 + S, c0:c0 + head_dim]              # (S, dh)
                k_bh = k[r0:r0 + S, c0:c0 + head_dim]
                v_bh = v[r0:r0 + S, c0:c0 + head_dim]
                # scores = q_bh @ k_bh^T (contraction on head_dim, no transpose op)
                s = jax.lax.dot_general(
                    q_bh, k_bh, (((1,), (1,)), ((), ())),
                    preferred_element_type=jnp.float32)            # (S, S)
                s = s + bias_b                                     # broadcast over queries
                m = jnp.max(s, axis=-1, keepdims=True)
                p = jnp.exp(s - m)
                denom = jnp.sum(p, axis=-1, keepdims=True)
                p = p * pl.reciprocal(denom, approx=True)
                head_cols.append(jnp.dot(p, v_bh,
                                         preferred_element_type=jnp.float32))
            batch_rows.append(jnp.concatenate(head_cols, axis=1))  # (S, H)
        ctx = jnp.concatenate(batch_rows, axis=0)                  # (B*S, H)

        # Output projection + residual LayerNorm.
        attn_out = jnp.dot(ctx, wo_ref[l],
                           preferred_element_type=jnp.float32) + bo_ref[l]
        x = layernorm(attn_out + x, ln1g_ref[l], ln1b_ref[l])

        # Feed-forward (GELU) + residual LayerNorm.
        h1 = gelu(jnp.dot(x, w1_ref[l],
                          preferred_element_type=jnp.float32) + b1_ref[l])
        ffn = jnp.dot(h1, w2_ref[l],
                      preferred_element_type=jnp.float32) + b2_ref[l]
        x = layernorm(ffn + x, ln2g_ref[l], ln2b_ref[l])

    o_ref[...] = x.astype(o_ref.dtype)


# --------------------------- parameters / model -----------------------------

CONFIG = dict(vocab_size=100, hidden=32, num_layers=2, num_heads=4,
              intermediate=64, max_position=16, type_vocab=2, eps=1e-12)


def init_params(key, cfg):
    H, I = cfg["hidden"], cfg["intermediate"]

    def normal(k, shape):
        return 0.02 * jax.random.normal(k, shape, jnp.float32)

    keys = iter(jax.random.split(key, 64))
    params = {
        "word_emb": normal(next(keys), (cfg["vocab_size"], H)),
        "pos_emb": normal(next(keys), (cfg["max_position"], H)),
        "type_emb": normal(next(keys), (cfg["type_vocab"], H)),
        "emb_ln_g": jnp.ones((H,), jnp.float32),
        "emb_ln_b": jnp.zeros((H,), jnp.float32),
        "layers": [],
    }
    for _ in range(cfg["num_layers"]):
        params["layers"].append({
            "wq": normal(next(keys), (H, H)), "bq": jnp.zeros((H,), jnp.float32),
            "wk": normal(next(keys), (H, H)), "bk": jnp.zeros((H,), jnp.float32),
            "wv": normal(next(keys), (H, H)), "bv": jnp.zeros((H,), jnp.float32),
            "wo": normal(next(keys), (H, H)), "bo": jnp.zeros((H,), jnp.float32),
            "attn_ln_g": jnp.ones((H,), jnp.float32),
            "attn_ln_b": jnp.zeros((H,), jnp.float32),
            "w1": normal(next(keys), (H, I)), "b1": jnp.zeros((I,), jnp.float32),
            "w2": normal(next(keys), (I, H)), "b2": jnp.zeros((H,), jnp.float32),
            "out_ln_g": jnp.ones((H,), jnp.float32),
            "out_ln_b": jnp.zeros((H,), jnp.float32),
        })
    return params


def sequence_processor_forward(params, input_ids, attention_mask=None,
                               cfg=CONFIG):
    """Equivalent of SequenceProcessor.forward: returns last_hidden_state."""
    B, S = input_ids.shape
    H, nh, L = cfg["hidden"], cfg["num_heads"], cfg["num_layers"]
    I = cfg["intermediate"]
    dh = H // nh
    if attention_mask is None:
        attention_mask = jnp.ones((B, S), jnp.int32)

    # TODO(synk): embedding-table gather stays in XLA (pure gather); word+pos+
    # type add is one tiny fused XLA op feeding the single Pallas call.
    word = jnp.take(params["word_emb"], input_ids, axis=0)           # (B,S,H)
    pos = params["pos_emb"][:S][None, :, :]                           # (1,S,H)
    typ = params["type_emb"][0][None, None, :]                        # (1,1,H)
    emb = (word + pos + typ).reshape(B * S, H).astype(jnp.float32)

    scale = 1.0 / math.sqrt(dh)

    def stack(fn):
        return jnp.stack([fn(layer) for layer in params["layers"]], axis=0)

    # Fused QKV weights with the attention scale folded into the Q slice.
    wqkv = stack(lambda l: jnp.concatenate(
        [l["wq"] * scale, l["wk"], l["wv"]], axis=1))                 # (L,H,3H)
    bqkv = stack(lambda l: jnp.concatenate(
        [l["bq"] * scale, l["bk"], l["bv"]], axis=0).reshape(1, 3 * H))
    wo = stack(lambda l: l["wo"])                                     # (L,H,H)
    bo = stack(lambda l: l["bo"].reshape(1, H))
    ln1g = stack(lambda l: l["attn_ln_g"].reshape(1, H))
    ln1b = stack(lambda l: l["attn_ln_b"].reshape(1, H))
    w1 = stack(lambda l: l["w1"])                                     # (L,H,I)
    b1 = stack(lambda l: l["b1"].reshape(1, I))
    w2 = stack(lambda l: l["w2"])                                     # (L,I,H)
    b2 = stack(lambda l: l["b2"].reshape(1, H))
    ln2g = stack(lambda l: l["out_ln_g"].reshape(1, H))
    ln2b = stack(lambda l: l["out_ln_b"].reshape(1, H))

    kern = functools.partial(_encoder_kernel, num_layers=L, num_heads=nh,
                             head_dim=dh, B=B, S=S, eps=cfg["eps"])

    out = pl.pallas_call(
        kern,
        out_shape=jax.ShapeDtypeStruct((B * S, H), jnp.float32),
        in_specs=[_VMEM] * 16,
        out_specs=_VMEM,
        compiler_params=pltpu.CompilerParams(vmem_limit_bytes=32 * 1024 * 1024),
    )(emb, attention_mask.astype(jnp.float32),
      params["emb_ln_g"].reshape(1, H), params["emb_ln_b"].reshape(1, H),
      wqkv, bqkv, wo, bo, ln1g, ln1b, w1, b1, w2, b2, ln2g, ln2b)

    return out.reshape(B, S, H)   # last_hidden_state


# ---------------------------------- main ------------------------------------

if __name__ == "__main__":
    key = jax.random.PRNGKey(0)
    pkey, ikey = jax.random.split(key)

    params = init_params(pkey, CONFIG)

    B, S = 2, 8
    input_ids = jax.random.randint(ikey, (B, S), 0, CONFIG["vocab_size"],
                                   dtype=jnp.int32)
    attention_mask = jnp.array([[1, 1, 1, 1, 1, 1, 1, 1],
                                [1, 1, 1, 1, 1, 1, 0, 0]], dtype=jnp.int32)

    fwd = jax.jit(functools.partial(sequence_processor_forward, cfg=CONFIG))
    last_hidden_state = fwd(params, input_ids, attention_mask)
    jax.block_until_ready(last_hidden_state)

    assert last_hidden_state.shape == (B, S, CONFIG["hidden"])
    assert last_hidden_state.dtype == jnp.float32
    assert bool(jnp.all(jnp.isfinite(last_hidden_state)))
    print("KERNEL_OK")
</pallas_src>

<mosaic_0001>
module attributes {stable_mosaic.version = 11 : i64} {
  func.func @_encoder_kernel(%arg0: memref<16x32xf32, #tpu.memory_space<vmem>>, %arg1: memref<2x8xf32, #tpu.memory_space<vmem>>, %arg2: memref<1x32xf32, #tpu.memory_space<vmem>>, %arg3: memref<1x32xf32, #tpu.memory_space<vmem>>, %arg4: memref<2x32x96xf32, #tpu.memory_space<vmem>>, %arg5: memref<2x1x96xf32, #tpu.memory_space<vmem>>, %arg6: memref<2x32x32xf32, #tpu.memory_space<vmem>>, %arg7: memref<2x1x32xf32, #tpu.memory_space<vmem>>, %arg8: memref<2x1x32xf32, #tpu.memory_space<vmem>>, %arg9: memref<2x1x32xf32, #tpu.memory_space<vmem>>, %arg10: memref<2x32x64xf32, #tpu.memory_space<vmem>>, %arg11: memref<2x1x64xf32, #tpu.memory_space<vmem>>, %arg12: memref<2x64x32xf32, #tpu.memory_space<vmem>>, %arg13: memref<2x1x32xf32, #tpu.memory_space<vmem>>, %arg14: memref<2x1x32xf32, #tpu.memory_space<vmem>>, %arg15: memref<2x1x32xf32, #tpu.memory_space<vmem>>, %arg16: memref<16x32xf32, #tpu.memory_space<vmem>>) attributes {dimension_semantics = [], scalar_prefetch = 0 : i64, scratch_operands = 0 : i64, tpu.core_type = #tpu.core_type<tc>} {
    %c0 = arith.constant 0 : index
    %c0_0 = arith.constant 0 : index
    %0 = vector.load %arg0[%c0, %c0_0] : memref<16x32xf32, #tpu.memory_space<vmem>>, vector<16x32xf32>
    %c0_1 = arith.constant 0 : index
    %c0_2 = arith.constant 0 : index
    %1 = vector.load %arg2[%c0_1, %c0_2] : memref<1x32xf32, #tpu.memory_space<vmem>>, vector<1x32xf32>
    %c0_3 = arith.constant 0 : index
    %c0_4 = arith.constant 0 : index
    %2 = vector.load %arg3[%c0_3, %c0_4] : memref<1x32xf32, #tpu.memory_space<vmem>>, vector<1x32xf32>
    %cst = arith.constant dense<0.000000e+00> : vector<16xf32>
    %3 = vector.multi_reduction <add>, %0, %cst [1] : vector<16x32xf32> to vector<16xf32>
    %4 = vector.shape_cast %3 : vector<16xf32> to vector<16x1xf32>
    %cst_5 = arith.constant 3.200000e+01 : f32
    %5 = vector.broadcast %cst_5 : f32 to vector<16x1xf32>
    %6 = arith.divf %4, %5 : vector<16x1xf32>
    %7 = vector.broadcast %6 : vector<16x1xf32> to vector<16x32xf32>
    %8 = arith.subf %0, %7 : vector<16x32xf32>
    %9 = arith.mulf %8, %8 : vector<16x32xf32>
    %cst_6 = arith.constant dense<0.000000e+00> : vector<16xf32>
    %10 = vector.multi_reduction <add>, %9, %cst_6 [1] : vector<16x32xf32> to vector<16xf32>
    %11 = vector.shape_cast %10 : vector<16xf32> to vector<16x1xf32>
    %cst_7 = arith.constant 3.200000e+01 : f32
    %12 = vector.broadcast %cst_7 : f32 to vector<16x1xf32>
    %13 = arith.divf %11, %12 : vector<16x1xf32>
    %cst_8 = arith.constant 9.99999996E-13 : f32
    %14 = vector.broadcast %cst_8 : f32 to vector<16x1xf32>
    %15 = arith.addf %13, %14 : vector<16x1xf32>
    %16 = math.rsqrt %15 : vector<16x1xf32>
    %17 = vector.broadcast %16 : vector<16x1xf32> to vector<16x32xf32>
    %18 = arith.mulf %8, %17 : vector<16x32xf32>
    %19 = vector.broadcast %1 : vector<1x32xf32> to vector<16x32xf32>
    %20 = arith.mulf %18, %19 : vector<16x32xf32>
    %21 = vector.broadcast %2 : vector<1x32xf32> to vector<16x32xf32>
    %22 = arith.addf %20, %21 : vector<16x32xf32>
    %c0_9 = arith.constant 0 : index
    %c0_10 = arith.constant 0 : index
    %23 = vector.load %arg1[%c0_9, %c0_10] : memref<2x8xf32, #tpu.memory_space<vmem>>, vector<2x8xf32>
    %cst_11 = arith.constant 1.000000e+00 : f32
    %24 = vector.broadcast %cst_11 : f32 to vector<2x8xf32>
    %25 = arith.subf %24, %23 : vector<2x8xf32>
    %cst_12 = arith.constant -1.000000e+04 : f32
    %26 = vector.broadcast %cst_12 : f32 to vector<2x8xf32>
    %27 = arith.mulf %25, %26 : vector<2x8xf32>
    %c0_13 = arith.constant 0 : index
    %c0_14 = arith.constant 0 : index
    %c0_15 = arith.constant 0 : index
    %28 = vector.load %arg4[%c0_13, %c0_14, %c0_15] : memref<2x32x96xf32, #tpu.memory_space<vmem>>, vector<1x32x96xf32>
    %29 = vector.shape_cast %28 : vector<1x32x96xf32> to vector<32x96xf32>
    %cst_16 = arith.constant dense<0.000000e+00> : vector<16x96xf32>
    %30 = tpu.matmul %22, %29, %cst_16 {dimension_numbers = #tpu.dot_dimension_numbers<[1], [0], [0], [1], [0, 0, 1, 1], [], []>} : vector<16x32xf32>, vector<32x96xf32>, vector<16x96xf32> -> vector<16x96xf32>
    %c0_17 = arith.constant 0 : index
    %c0_18 = arith.constant 0 : index
    %c0_19 = arith.constant 0 : index
    %31 = vector.load %arg5[%c0_17, %c0_18, %c0_19] : memref<2x1x96xf32, #tpu.memory_space<vmem>>, vector<1x1x96xf32>
    %32 = vector.shape_cast %31 : vector<1x1x96xf32> to vector<1x96xf32>
    %33 = vector.broadcast %32 : vector<1x96xf32> to vector<16x96xf32>
    %34 = arith.addf %30, %33 : vector<16x96xf32>
    %35 = vector.extract_strided_slice %34 {offsets = [0, 0], sizes = [16, 32], strides = [1, 1]} : vector<16x96xf32> to vector<16x32xf32>
    %36 = vector.extract_strided_slice %34 {offsets = [0, 32], sizes = [16, 32], strides = [1, 1]} : vector<16x96xf32> to vector<16x32xf32>
    %37 = vector.extract_strided_slice %34 {offsets = [0, 64], sizes = [16, 32], strides = [1, 1]} : vector<16x96xf32> to vector<16x32xf32>
    %38 = vector.extract_strided_slice %27 {offsets = [0, 0], sizes = [1, 8], strides = [1, 1]} : vector<2x8xf32> to vector<1x8xf32>
    %39 = vector.extract_strided_slice %35 {offsets = [0, 0], sizes = [8, 8], strides = [1, 1]} : vector<16x32xf32> to vector<8x8xf32>
    %40 = vector.extract_strided_slice %36 {offsets = [0, 0], sizes = [8, 8], strides = [1, 1]} : vector<16x32xf32> to vector<8x8xf32>
    %41 = vector.extract_strided_slice %37 {offsets = [0, 0], sizes = [8, 8], strides = [1, 1]} : vector<16x32xf32> to vector<8x8xf32>
    %cst_20 = arith.constant dense<0.000000e+00> : vector<8x8xf32>
    %42 = tpu.matmul %39, %40, %cst_20 {dimension_numbers = #tpu.dot_dimension_numbers<[1], [1], [0], [0], [0, 0, 1, 0], [], []>} : vector<8x8xf32>, vector<8x8xf32>, vector<8x8xf32> -> vector<8x8xf32>
    %43 = vector.broadcast %38 : vector<1x8xf32> to vector<8x8xf32>
    %44 = arith.addf %42, %43 : vector<8x8xf32>
    %cst_21 = arith.constant dense<0xFF800000> : vector<8xf32>
    %45 = vector.multi_reduction <maximumf>, %44, %cst_21 [1] : vector<8x8xf32> to vector<8xf32>
    %46 = vector.shape_cast %45 : vector<8xf32> to vector<8x1xf32>
    %47 = vector.broadcast %46 : vector<8x1xf32> to vector<8x8xf32>
    %48 = arith.subf %44, %47 : vector<8x8xf32>
    %49 = math.exp %48 : vector<8x8xf32>
    %cst_22 = arith.constant dense<0.000000e+00> : vector<8xf32>
    %50 = vector.multi_reduction <add>, %49, %cst_22 [1] : vector<8x8xf32> to vector<8xf32>
    %51 = vector.shape_cast %50 : vector<8xf32> to vector<8x1xf32>
    %52 = tpu.reciprocal %51 {approx = true} : vector<8x1xf32> -> vector<8x1xf32>
    %53 = vector.broadcast %52 : vector<8x1xf32> to vector<8x8xf32>
    %54 = arith.mulf %49, %53 : vector<8x8xf32>
    %cst_23 = arith.constant dense<0.000000e+00> : vector<8x8xf32>
    %55 = tpu.matmul %54, %41, %cst_23 {dimension_numbers = #tpu.dot_dimension_numbers<[1], [0], [0], [1], [0, 0, 1, 1], [], []>} : vector<8x8xf32>, vector<8x8xf32>, vector<8x8xf32> -> vector<8x8xf32>
    %56 = vector.extract_strided_slice %35 {offsets = [0, 8], sizes = [8, 8], strides = [1, 1]} : vector<16x32xf32> to vector<8x8xf32>
    %57 = vector.extract_strided_slice %36 {offsets = [0, 8], sizes = [8, 8], strides = [1, 1]} : vector<16x32xf32> to vector<8x8xf32>
    %58 = vector.extract_strided_slice %37 {offsets = [0, 8], sizes = [8, 8], strides = [1, 1]} : vector<16x32xf32> to vector<8x8xf32>
    %cst_24 = arith.constant dense<0.000000e+00> : vector<8x8xf32>
    %59 = tpu.matmul %56, %57, %cst_24 {dimension_numbers = #tpu.dot_dimension_numbers<[1], [1], [0], [0], [0, 0, 1, 0], [], []>} : vector<8x8xf32>, vector<8x8xf32>, vector<8x8xf32> -> vector<8x8xf32>
    %60 = vector.broadcast %38 : vector<1x8xf32> to vector<8x8xf32>
    %61 = arith.addf %59, %60 : vector<8x8xf32>
    %cst_25 = arith.constant dense<0xFF800000> : vector<8xf32>
    %62 = vector.multi_reduction <maximumf>, %61, %cst_25 [1] : vector<8x8xf32> to vector<8xf32>
    %63 = vector.shape_cast %62 : vector<8xf32> to vector<8x1xf32>
    %64 = vector.broadcast %63 : vector<8x1xf32> to vector<8x8xf32>
    %65 = arith.subf %61, %64 : vector<8x8xf32>
    %66 = math.exp %65 : vector<8x8xf32>
    %cst_26 = arith.constant dense<0.000000e+00> : vector<8xf32>
    %67 = vector.multi_reduction <add>, %66, %cst_26 [1] : vector<8x8xf32> to vector<8xf32>
    %68 = vector.shape_cast %67 : vector<8xf32> to vector<8x1xf32>
    %69 = tpu.reciprocal %68 {approx = true} : vector<8x1xf32> -> vector<8x1xf32>
    %70 = vector.broadcast %69 : vector<8x1xf32> to vector<8x8xf32>
    %71 = arith.mulf %66, %70 : vector<8x8xf32>
    %cst_27 = arith.constant dense<0.000000e+00> : vector<8x8xf32>
    %72 = tpu.matmul %71, %58, %cst_27 {dimension_numbers = #tpu.dot_dimension_numbers<[1], [0], [0], [1], [0, 0, 1, 1], [], []>} : vector<8x8xf32>, vector<8x8xf32>, vector<8x8xf32> -> vector<8x8xf32>
    %73 = vector.extract_strided_slice %35 {offsets = [0, 16], sizes = [8, 8], strides = [1, 1]} : vector<16x32xf32> to vector<8x8xf32>
    %74 = vector.extract_strided_slice %36 {offsets = [0, 16], sizes = [8, 8], strides = [1, 1]} : vector<16x32xf32> to vector<8x8xf32>
    %75 = vector.extract_strided_slice %37 {offsets = [0, 16], sizes = [8, 8], strides = [1, 1]} : vector<16x32xf32> to vector<8x8xf32>
    %cst_28 = arith.constant dense<0.000000e+00> : vector<8x8xf32>
    %76 = tpu.matmul %73, %74, %cst_28 {dimension_numbers = #tpu.dot_dimension_numbers<[1], [1], [0], [0], [0, 0, 1, 0], [], []>} : vector<8x8xf32>, vector<8x8xf32>, vector<8x8xf32> -> vector<8x8xf32>
    %77 = vector.broadcast %38 : vector<1x8xf32> to vector<8x8xf32>
    %78 = arith.addf %76, %77 : vector<8x8xf32>
    %cst_29 = arith.constant dense<0xFF800000> : vector<8xf32>
    %79 = vector.multi_reduction <maximumf>, %78, %cst_29 [1] : vector<8x8xf32> to vector<8xf32>
    %80 = vector.shape_cast %79 : vector<8xf32> to vector<8x1xf32>
    %81 = vector.broadcast %80 : vector<8x1xf32> to vector<8x8xf32>
    %82 = arith.subf %78, %81 : vector<8x8xf32>
    %83 = math.exp %82 : vector<8x8xf32>
    %cst_30 = arith.constant dense<0.000000e+00> : vector<8xf32>
    %84 = vector.multi_reduction <add>, %83, %cst_30 [1] : vector<8x8xf32> to vector<8xf32>
    %85 = vector.shape_cast %84 : vector<8xf32> to vector<8x1xf32>
    %86 = tpu.reciprocal %85 {approx = true} : vector<8x1xf32> -> vector<8x1xf32>
    %87 = vector.broadcast %86 : vector<8x1xf32> to vector<8x8xf32>
    %88 = arith.mulf %83, %87 : vector<8x8xf32>
    %cst_31 = arith.constant dense<0.000000e+00> : vector<8x8xf32>
    %89 = tpu.matmul %88, %75, %cst_31 {dimension_numbers = #tpu.dot_dimension_numbers<[1], [0], [0], [1], [0, 0, 1, 1], [], []>} : vector<8x8xf32>, vector<8x8xf32>, vector<8x8xf32> -> vector<8x8xf32>
    %90 = vector.extract_strided_slice %35 {offsets = [0, 24], sizes = [8, 8], strides = [1, 1]} : vector<16x32xf32> to vector<8x8xf32>
    %91 = vector.extract_strided_slice %36 {offsets = [0, 24], sizes = [8, 8], strides = [1, 1]} : vector<16x32xf32> to vector<8x8xf32>
    %92 = vector.extract_strided_slice %37 {offsets = [0, 24], sizes = [8, 8], strides = [1, 1]} : vector<16x32xf32> to vector<8x8xf32>
    %cst_32 = arith.constant dense<0.000000e+00> : vector<8x8xf32>
    %93 = tpu.matmul %90, %91, %cst_32 {dimension_numbers = #tpu.dot_dimension_numbers<[1], [1], [0], [0], [0, 0, 1, 0], [], []>} : vector<8x8xf32>, vector<8x8xf32>, vector<8x8xf32> -> vector<8x8xf32>
    %94 = vector.broadcast %38 : vector<1x8xf32> to vector<8x8xf32>
    %95 = arith.addf %93, %94 : vector<8x8xf32>
    %cst_33 = arith.constant dense<0xFF800000> : vector<8xf32>
    %96 = vector.multi_reduction <maximumf>, %95, %cst_33 [1] : vector<8x8xf32> to vector<8xf32>
    %97 = vector.shape_cast %96 : vector<8xf32> to vector<8x1xf32>
    %98 = vector.broadcast %97 : vector<8x1xf32> to vector<8x8xf32>
    %99 = arith.subf %95, %98 : vector<8x8xf32>
    %100 = math.exp %99 : vector<8x8xf32>
    %cst_34 = arith.constant dense<0.000000e+00> : vector<8xf32>
    %101 = vector.multi_reduction <add>, %100, %cst_34 [1] : vector<8x8xf32> to vector<8xf32>
    %102 = vector.shape_cast %101 : vector<8xf32> to vector<8x1xf32>
    %103 = tpu.reciprocal %102 {approx = true} : vector<8x1xf32> -> vector<8x1xf32>
    %104 = vector.broadcast %103 : vector<8x1xf32> to vector<8x8xf32>
    %105 = arith.mulf %100, %104 : vector<8x8xf32>
    %cst_35 = arith.constant dense<0.000000e+00> : vector<8x8xf32>
    %106 = tpu.matmul %105, %92, %cst_35 {dimension_numbers = #tpu.dot_dimension_numbers<[1], [0], [0], [1], [0, 0, 1, 1], [], []>} : vector<8x8xf32>, vector<8x8xf32>, vector<8x8xf32> -> vector<8x8xf32>
    %107 = tpu.concatenate %55, %72, %89, %106 in 1 : vector<8x8xf32>, vector<8x8xf32>, vector<8x8xf32>, vector<8x8xf32> -> vector<8x32xf32>
    %108 = vector.extract_strided_slice %27 {offsets = [1, 0], sizes = [1, 8], strides = [1, 1]} : vector<2x8xf32> to vector<1x8xf32>
    %109 = vector.extract_strided_slice %35 {offsets = [8, 0], sizes = [8, 8], strides = [1, 1]} : vector<16x32xf32> to vector<8x8xf32>
    %110 = vector.extract_strided_slice %36 {offsets = [8, 0], sizes = [8, 8], strides = [1, 1]} : vector<16x32xf32> to vector<8x8xf32>
    %111 = vector.extract_strided_slice %37 {offsets = [8, 0], sizes = [8, 8], strides = [1, 1]} : vector<16x32xf32> to vector<8x8xf32>
    %cst_36 = arith.constant dense<0.000000e+00> : vector<8x8xf32>
    %112 = tpu.matmul %109, %110, %cst_36 {dimension_numbers = #tpu.dot_dimension_numbers<[1], [1], [0], [0], [0, 0, 1, 0], [], []>} : vector<8x8xf32>, vector<8x8xf32>, vector<8x8xf32> -> vector<8x8xf32>
    %113 = vector.broadcast %108 : vector<1x8xf32> to vector<8x8xf32>
    %114 = arith.addf %112, %113 : vector<8x8xf32>
    %cst_37 = arith.constant dense<0xFF800000> : vector<8xf32>
    %115 = vector.multi_reduction <maximumf>, %114, %cst_37 [1] : vector<8x8xf32> to vector<8xf32>
    %116 = vector.shape_cast %115 : vector<8xf32> to vector<8x1xf32>
    %117 = vector.broadcast %116 : vector<8x1xf32> to vector<8x8xf32>
    %118 = arith.subf %114, %117 : vector<8x8xf32>
    %119 = math.exp %118 : vector<8x8xf32>
    %cst_38 = arith.constant dense<0.000000e+00> : vector<8xf32>
    %120 = vector.multi_reduction <add>, %119, %cst_38 [1] : vector<8x8xf32> to vector<8xf32>
    %121 = vector.shape_cast %120 : vector<8xf32> to vector<8x1xf32>
    %122 = tpu.reciprocal %121 {approx = true} : vector<8x1xf32> -> vector<8x1xf32>
    %123 = vector.broadcast %122 : vector<8x1xf32> to vector<8x8xf32>
    %124 = arith.mulf %119, %123 : vector<8x8xf32>
    %cst_39 = arith.constant dense<0.000000e+00> : vector<8x8xf32>
    %125 = tpu.matmul %124, %111, %cst_39 {dimension_numbers = #tpu.dot_dimension_numbers<[1], [0], [0], [1], [0, 0, 1, 1], [], []>} : vector<8x8xf32>, vector<8x8xf32>, vector<8x8xf32> -> vector<8x8xf32>
    %126 = vector.extract_strided_slice %35 {offsets = [8, 8], sizes = [8, 8], strides = [1, 1]} : vector<16x32xf32> to vector<8x8xf32>
    %127 = vector.extract_strided_slice %36 {offsets = [8, 8], sizes = [8, 8], strides = [1, 1]} : vector<16x32xf32> to vector<8x8xf32>
    %128 = vector.extract_strided_slice %37 {offsets = [8, 8], sizes = [8, 8], strides = [1, 1]} : vector<16x32xf32> to vector<8x8xf32>
    %cst_40 = arith.constant dense<0.000000e+00> : vector<8x8xf32>
    %129 = tpu.matmul %126, %127, %cst_40 {dimension_numbers = #tpu.dot_dimension_numbers<[1], [1], [0], [0], [0, 0, 1, 0], [], []>} : vector<8x8xf32>, vector<8x8xf32>, vector<8x8xf32> -> vector<8x8xf32>
    %130 = vector.broadcast %108 : vector<1x8xf32> to vector<8x8xf32>
    %131 = arith.addf %129, %130 : vector<8x8xf32>
    %cst_41 = arith.constant dense<0xFF800000> : vector<8xf32>
    %132 = vector.multi_reduction <maximumf>, %131, %cst_41 [1] : vector<8x8xf32> to vector<8xf32>
    %133 = vector.shape_cast %132 : vector<8xf32> to vector<8x1xf32>
    %134 = vector.broadcast %133 : vector<8x1xf32> to vector<8x8xf32>
    %135 = arith.subf %131, %134 : vector<8x8xf32>
    %136 = math.exp %135 : vector<8x8xf32>
    %cst_42 = arith.constant dense<0.000000e+00> : vector<8xf32>
    %137 = vector.multi_reduction <add>, %136, %cst_42 [1] : vector<8x8xf32> to vector<8xf32>
    %138 = vector.shape_cast %137 : vector<8xf32> to vector<8x1xf32>
    %139 = tpu.reciprocal %138 {approx = true} : vector<8x1xf32> -> vector<8x1xf32>
    %140 = vector.broadcast %139 : vector<8x1xf32> to vector<8x8xf32>
    %141 = arith.mulf %136, %140 : vector<8x8xf32>
    %cst_43 = arith.constant dense<0.000000e+00> : vector<8x8xf32>
    %142 = tpu.matmul %141, %128, %cst_43 {dimension_numbers = #tpu.dot_dimension_numbers<[1], [0], [0], [1], [0, 0, 1, 1], [], []>} : vector<8x8xf32>, vector<8x8xf32>, vector<8x8xf32> -> vector<8x8xf32>
    %143 = vector.extract_strided_slice %35 {offsets = [8, 16], sizes = [8, 8], strides = [1, 1]} : vector<16x32xf32> to vector<8x8xf32>
    %144 = vector.extract_strided_slice %36 {offsets = [8, 16], sizes = [8, 8], strides = [1, 1]} : vector<16x32xf32> to vector<8x8xf32>
    %145 = vector.extract_strided_slice %37 {offsets = [8, 16], sizes = [8, 8], strides = [1, 1]} : vector<16x32xf32> to vector<8x8xf32>
    %cst_44 = arith.constant dense<0.000000e+00> : vector<8x8xf32>
    %146 = tpu.matmul %143, %144, %cst_44 {dimension_numbers = #tpu.dot_dimension_numbers<[1], [1], [0], [0], [0, 0, 1, 0], [], []>} : vector<8x8xf32>, vector<8x8xf32>, vector<8x8xf32> -> vector<8x8xf32>
    %147 = vector.broadcast %108 : vector<1x8xf32> to vector<8x8xf32>
    %148 = arith.addf %146, %147 : vector<8x8xf32>
    %cst_45 = arith.constant dense<0xFF800000> : vector<8xf32>
    %149 = vector.multi_reduction <maximumf>, %148, %cst_45 [1] : vector<8x8xf32> to vector<8xf32>
    %150 = vector.shape_cast %149 : vector<8xf32> to vector<8x1xf32>
    %151 = vector.broadcast %150 : vector<8x1xf32> to vector<8x8xf32>
    %152 = arith.subf %148, %151 : vector<8x8xf32>
    %153 = math.exp %152 : vector<8x8xf32>
    %cst_46 = arith.constant dense<0.000000e+00> : vector<8xf32>
    %154 = vector.multi_reduction <add>, %153, %cst_46 [1] : vector<8x8xf32> to vector<8xf32>
    %155 = vector.shape_cast %154 : vector<8xf32> to vector<8x1xf32>
    %156 = tpu.reciprocal %155 {approx = true} : vector<8x1xf32> -> vector<8x1xf32>
    %157 = vector.broadcast %156 : vector<8x1xf32> to vector<8x8xf32>
    %158 = arith.mulf %153, %157 : vector<8x8xf32>
    %cst_47 = arith.constant dense<0.000000e+00> : vector<8x8xf32>
    %159 = tpu.matmul %158, %145, %cst_47 {dimension_numbers = #tpu.dot_dimension_numbers<[1], [0], [0], [1], [0, 0, 1, 1], [], []>} : vector<8x8xf32>, vector<8x8xf32>, vector<8x8xf32> -> vector<8x8xf32>
    %160 = vector.extract_strided_slice %35 {offsets = [8, 24], sizes = [8, 8], strides = [1, 1]} : vector<16x32xf32> to vector<8x8xf32>
    %161 = vector.extract_strided_slice %36 {offsets = [8, 24], sizes = [8, 8], strides = [1, 1]} : vector<16x32xf32> to vector<8x8xf32>
    %162 = vector.extract_strided_slice %37 {offsets = [8, 24], sizes = [8, 8], strides = [1, 1]} : vector<16x32xf32> to vector<8x8xf32>
    %cst_48 = arith.constant dense<0.000000e+00> : vector<8x8xf32>
    %163 = tpu.matmul %160, %161, %cst_48 {dimension_numbers = #tpu.dot_dimension_numbers<[1], [1], [0], [0], [0, 0, 1, 0], [], []>} : vector<8x8xf32>, vector<8x8xf32>, vector<8x8xf32> -> vector<8x8xf32>
    %164 = vector.broadcast %108 : vector<1x8xf32> to vector<8x8xf32>
    %165 = arith.addf %163, %164 : vector<8x8xf32>
    %cst_49 = arith.constant dense<0xFF800000> : vector<8xf32>
    %166 = vector.multi_reduction <maximumf>, %165, %cst_49 [1] : vector<8x8xf32> to vector<8xf32>
    %167 = vector.shape_cast %166 : vector<8xf32> to vector<8x1xf32>
    %168 = vector.broadcast %167 : vector<8x1xf32> to vector<8x8xf32>
    %169 = arith.subf %165, %168 : vector<8x8xf32>
    %170 = math.exp %169 : vector<8x8xf32>
    %cst_50 = arith.constant dense<0.000000e+00> : vector<8xf32>
    %171 = vector.multi_reduction <add>, %170, %cst_50 [1] : vector<8x8xf32> to vector<8xf32>
    %172 = vector.shape_cast %171 : vector<8xf32> to vector<8x1xf32>
    %173 = tpu.reciprocal %172 {approx = true} : vector<8x1xf32> -> vector<8x1xf32>
    %174 = vector.broadcast %173 : vector<8x1xf32> to vector<8x8xf32>
    %175 = arith.mulf %170, %174 : vector<8x8xf32>
    %cst_51 = arith.constant dense<0.000000e+00> : vector<8x8xf32>
    %176 = tpu.matmul %175, %162, %cst_51 {dimension_numbers = #tpu.dot_dimension_numbers<[1], [0], [0], [1], [0, 0, 1, 1], [], []>} : vector<8x8xf32>, vector<8x8xf32>, vector<8x8xf32> -> vector<8x8xf32>
    %177 = tpu.concatenate %125, %142, %159, %176 in 1 : vector<8x8xf32>, vector<8x8xf32>, vector<8x8xf32>, vector<8x8xf32> -> vector<8x32xf32>
    %178 = tpu.concatenate %107, %177 in 0 : vector<8x32xf32>, vector<8x32xf32> -> vector<16x32xf32>
    %c0_52 = arith.constant 0 : index
    %c0_53 = arith.constant 0 : index
    %c0_54 = arith.constant 0 : index
    %179 = vector.load %arg6[%c0_52, %c0_53, %c0_54] : memref<2x32x32xf32, #tpu.memory_space<vmem>>, vector<1x32x32xf32>
    %180 = vector.shape_cast %179 : vector<1x32x32xf32> to vector<32x32xf32>
    %cst_55 = arith.constant dense<0.000000e+00> : vector<16x32xf32>
    %181 = tpu.matmul %178, %180, %cst_55 {dimension_numbers = #tpu.dot_dimension_numbers<[1], [0], [0], [1], [0, 0, 1, 1], [], []>} : vector<16x32xf32>, vector<32x32xf32>, vector<16x32xf32> -> vector<16x32xf32>
    %c0_56 = arith.constant 0 : index
    %c0_57 = arith.constant 0 : index
    %c0_58 = arith.constant 0 : index
    %182 = vector.load %arg7[%c0_56, %c0_57, %c0_58] : memref<2x1x32xf32, #tpu.memory_space<vmem>>, vector<1x1x32xf32>
    %183 = vector.shape_cast %182 : vector<1x1x32xf32> to vector<1x32xf32>
    %184 = vector.broadcast %183 : vector<1x32xf32> to vector<16x32xf32>
    %185 = arith.addf %181, %184 : vector<16x32xf32>
    %186 = arith.addf %185, %22 : vector<16x32xf32>
    %c0_59 = arith.constant 0 : index
    %c0_60 = arith.constant 0 : index
    %c0_61 = arith.constant 0 : index
    %187 = vector.load %arg8[%c0_59, %c0_60, %c0_61] : memref<2x1x32xf32, #tpu.memory_space<vmem>>, vector<1x1x32xf32>
    %188 = vector.shape_cast %187 : vector<1x1x32xf32> to vector<1x32xf32>
    %c0_62 = arith.constant 0 : index
    %c0_63 = arith.constant 0 : index
    %c0_64 = arith.constant 0 : index
    %189 = vector.load %arg9[%c0_62, %c0_63, %c0_64] : memref<2x1x32xf32, #tpu.memory_space<vmem>>, vector<1x1x32xf32>
    %190 = vector.shape_cast %189 : vector<1x1x32xf32> to vector<1x32xf32>
    %cst_65 = arith.constant dense<0.000000e+00> : vector<16xf32>
    %191 = vector.multi_reduction <add>, %186, %cst_65 [1] : vector<16x32xf32> to vector<16xf32>
    %192 = vector.shape_cast %191 : vector<16xf32> to vector<16x1xf32>
    %cst_66 = arith.constant 3.200000e+01 : f32
    %193 = vector.broadcast %cst_66 : f32 to vector<16x1xf32>
    %194 = arith.divf %192, %193 : vector<16x1xf32>
    %195 = vector.broadcast %194 : vector<16x1xf32> to vector<16x32xf32>
    %196 = arith.subf %186, %195 : vector<16x32xf32>
    %197 = arith.mulf %196, %196 : vector<16x32xf32>
    %cst_67 = arith.constant dense<0.000000e+00> : vector<16xf32>
    %198 = vector.multi_reduction <add>, %197, %cst_67 [1] : vector<16x32xf32> to vector<16xf32>
    %199 = vector.shape_cast %198 : vector<16xf32> to vector<16x1xf32>
    %cst_68 = arith.constant 3.200000e+01 : f32
    %200 = vector.broadcast %cst_68 : f32 to vector<16x1xf32>
    %201 = arith.divf %199, %200 : vector<16x1xf32>
    %cst_69 = arith.constant 9.99999996E-13 : f32
    %202 = vector.broadcast %cst_69 : f32 to vector<16x1xf32>
    %203 = arith.addf %201, %202 : vector<16x1xf32>
    %204 = math.rsqrt %203 : vector<16x1xf32>
    %205 = vector.broadcast %204 : vector<16x1xf32> to vector<16x32xf32>
    %206 = arith.mulf %196, %205 : vector<16x32xf32>
    %207 = vector.broadcast %188 : vector<1x32xf32> to vector<16x32xf32>
    %208 = arith.mulf %206, %207 : vector<16x32xf32>
    %209 = vector.broadcast %190 : vector<1x32xf32> to vector<16x32xf32>
    %210 = arith.addf %208, %209 : vector<16x32xf32>
    %c0_70 = arith.constant 0 : index
    %c0_71 = arith.constant 0 : index
    %c0_72 = arith.constant 0 : index
    %211 = vector.load %arg10[%c0_70, %c0_71, %c0_72] : memref<2x32x64xf32, #tpu.memory_space<vmem>>, vector<1x32x64xf32>
    %212 = vector.shape_cast %211 : vector<1x32x64xf32> to vector<32x64xf32>
    %cst_73 = arith.constant dense<0.000000e+00> : vector<16x64xf32>
    %213 = tpu.matmul %210, %212, %cst_73 {dimension_numbers = #tpu.dot_dimension_numbers<[1], [0], [0], [1], [0, 0, 1, 1], [], []>} : vector<16x32xf32>, vector<32x64xf32>, vector<16x64xf32> -> vector<16x64xf32>
    %c0_74 = arith.constant 0 : index
    %c0_75 = arith.constant 0 : index
    %c0_76 = arith.constant 0 : index
    %214 = vector.load %arg11[%c0_74, %c0_75, %c0_76] : memref<2x1x64xf32, #tpu.memory_space<vmem>>, vector<1x1x64xf32>
    %215 = vector.shape_cast %214 : vector<1x1x64xf32> to vector<1x64xf32>
    %216 = vector.broadcast %215 : vector<1x64xf32> to vector<16x64xf32>
    %217 = arith.addf %213, %216 : vector<16x64xf32>
    %cst_77 = arith.constant 5.000000e-01 : f32
    %218 = vector.broadcast %cst_77 : f32 to vector<16x64xf32>
    %219 = arith.mulf %218, %217 : vector<16x64xf32>
    %cst_78 = arith.constant 4.471500e-02 : f32
    %220 = vector.broadcast %cst_78 : f32 to vector<16x64xf32>
    %221 = arith.mulf %220, %217 : vector<16x64xf32>
    %222 = arith.mulf %221, %217 : vector<16x64xf32>
    %223 = arith.mulf %222, %217 : vector<16x64xf32>
    %224 = arith.addf %217, %223 : vector<16x64xf32>
    %cst_79 = arith.constant 0.797884583 : f32
    %225 = vector.broadcast %cst_79 : f32 to vector<16x64xf32>
    %226 = arith.mulf %225, %224 : vector<16x64xf32>
    %227 = math.tanh %226 : vector<16x64xf32>
    %cst_80 = arith.constant 1.000000e+00 : f32
    %228 = vector.broadcast %cst_80 : f32 to vector<16x64xf32>
    %229 = arith.addf %228, %227 : vector<16x64xf32>
    %230 = arith.mulf %219, %229 : vector<16x64xf32>
    %c0_81 = arith.constant 0 : index
    %c0_82 = arith.constant 0 : index
    %c0_83 = arith.constant 0 : index
    %231 = vector.load %arg12[%c0_81, %c0_82, %c0_83] : memref<2x64x32xf32, #tpu.memory_space<vmem>>, vector<1x64x32xf32>
    %232 = vector.shape_cast %231 : vector<1x64x32xf32> to vector<64x32xf32>
    %cst_84 = arith.constant dense<0.000000e+00> : vector<16x32xf32>
    %233 = tpu.matmul %230, %232, %cst_84 {dimension_numbers = #tpu.dot_dimension_numbers<[1], [0], [0], [1], [0, 0, 1, 1], [], []>} : vector<16x64xf32>, vector<64x32xf32>, vector<16x32xf32> -> vector<16x32xf32>
    %c0_85 = arith.constant 0 : index
    %c0_86 = arith.constant 0 : index
    %c0_87 = arith.constant 0 : index
    %234 = vector.load %arg13[%c0_85, %c0_86, %c0_87] : memref<2x1x32xf32, #tpu.memory_space<vmem>>, vector<1x1x32xf32>
    %235 = vector.shape_cast %234 : vector<1x1x32xf32> to vector<1x32xf32>
    %236 = vector.broadcast %235 : vector<1x32xf32> to vector<16x32xf32>
    %237 = arith.addf %233, %236 : vector<16x32xf32>
    %238 = arith.addf %237, %210 : vector<16x32xf32>
    %c0_88 = arith.constant 0 : index
    %c0_89 = arith.constant 0 : index
    %c0_90 = arith.constant 0 : index
    %239 = vector.load %arg14[%c0_88, %c0_89, %c0_90] : memref<2x1x32xf32, #tpu.memory_space<vmem>>, vector<1x1x32xf32>
    %240 = vector.shape_cast %239 : vector<1x1x32xf32> to vector<1x32xf32>
    %c0_91 = arith.constant 0 : index
    %c0_92 = arith.constant 0 : index
    %c0_93 = arith.constant 0 : index
    %241 = vector.load %arg15[%c0_91, %c0_92, %c0_93] : memref<2x1x32xf32, #tpu.memory_space<vmem>>, vector<1x1x32xf32>
    %242 = vector.shape_cast %241 : vector<1x1x32xf32> to vector<1x32xf32>
    %cst_94 = arith.constant dense<0.000000e+00> : vector<16xf32>
    %243 = vector.multi_reduction <add>, %238, %cst_94 [1] : vector<16x32xf32> to vector<16xf32>
    %244 = vector.shape_cast %243 : vector<16xf32> to vector<16x1xf32>
    %cst_95 = arith.constant 3.200000e+01 : f32
    %245 = vector.broadcast %cst_95 : f32 to vector<16x1xf32>
    %246 = arith.divf %244, %245 : vector<16x1xf32>
    %247 = vector.broadcast %246 : vector<16x1xf32> to vector<16x32xf32>
    %248 = arith.subf %238, %247 : vector<16x32xf32>
    %249 = arith.mulf %248, %248 : vector<16x32xf32>
    %cst_96 = arith.constant dense<0.000000e+00> : vector<16xf32>
    %250 = vector.multi_reduction <add>, %249, %cst_96 [1] : vector<16x32xf32> to vector<16xf32>
    %251 = vector.shape_cast %250 : vector<16xf32> to vector<16x1xf32>
    %cst_97 = arith.constant 3.200000e+01 : f32
    %252 = vector.broadcast %cst_97 : f32 to vector<16x1xf32>
    %253 = arith.divf %251, %252 : vector<16x1xf32>
    %cst_98 = arith.constant 9.99999996E-13 : f32
    %254 = vector.broadcast %cst_98 : f32 to vector<16x1xf32>
    %255 = arith.addf %253, %254 : vector<16x1xf32>
    %256 = math.rsqrt %255 : vector<16x1xf32>
    %257 = vector.broadcast %256 : vector<16x1xf32> to vector<16x32xf32>
    %258 = arith.mulf %248, %257 : vector<16x32xf32>
    %259 = vector.broadcast %240 : vector<1x32xf32> to vector<16x32xf32>
    %260 = arith.mulf %258, %259 : vector<16x32xf32>
    %261 = vector.broadcast %242 : vector<1x32xf32> to vector<16x32xf32>
    %262 = arith.addf %260, %261 : vector<16x32xf32>
    %c1 = arith.constant 1 : index
    %c0_99 = arith.constant 0 : index
    %c0_100 = arith.constant 0 : index
    %263 = vector.load %arg4[%c1, %c0_99, %c0_100] : memref<2x32x96xf32, #tpu.memory_space<vmem>>, vector<1x32x96xf32>
    %264 = vector.shape_cast %263 : vector<1x32x96xf32> to vector<32x96xf32>
    %cst_101 = arith.constant dense<0.000000e+00> : vector<16x96xf32>
    %265 = tpu.matmul %262, %264, %cst_101 {dimension_numbers = #tpu.dot_dimension_numbers<[1], [0], [0], [1], [0, 0, 1, 1], [], []>} : vector<16x32xf32>, vector<32x96xf32>, vector<16x96xf32> -> vector<16x96xf32>
    %c1_102 = arith.constant 1 : index
    %c0_103 = arith.constant 0 : index
    %c0_104 = arith.constant 0 : index
    %266 = vector.load %arg5[%c1_102, %c0_103, %c0_104] : memref<2x1x96xf32, #tpu.memory_space<vmem>>, vector<1x1x96xf32>
    %267 = vector.shape_cast %266 : vector<1x1x96xf32> to vector<1x96xf32>
    %268 = vector.broadcast %267 : vector<1x96xf32> to vector<16x96xf32>
    %269 = arith.addf %265, %268 : vector<16x96xf32>
    %270 = vector.extract_strided_slice %269 {offsets = [0, 0], sizes = [16, 32], strides = [1, 1]} : vector<16x96xf32> to vector<16x32xf32>
    %271 = vector.extract_strided_slice %269 {offsets = [0, 32], sizes = [16, 32], strides = [1, 1]} : vector<16x96xf32> to vector<16x32xf32>
    %272 = vector.extract_strided_slice %269 {offsets = [0, 64], sizes = [16, 32], strides = [1, 1]} : vector<16x96xf32> to vector<16x32xf32>
    %273 = vector.extract_strided_slice %27 {offsets = [0, 0], sizes = [1, 8], strides = [1, 1]} : vector<2x8xf32> to vector<1x8xf32>
    %274 = vector.extract_strided_slice %270 {offsets = [0, 0], sizes = [8, 8], strides = [1, 1]} : vector<16x32xf32> to vector<8x8xf32>
    %275 = vector.extract_strided_slice %271 {offsets = [0, 0], sizes = [8, 8], strides = [1, 1]} : vector<16x32xf32> to vector<8x8xf32>
    %276 = vector.extract_strided_slice %272 {offsets = [0, 0], sizes = [8, 8], strides = [1, 1]} : vector<16x32xf32> to vector<8x8xf32>
    %cst_105 = arith.constant dense<0.000000e+00> : vector<8x8xf32>
    %277 = tpu.matmul %274, %275, %cst_105 {dimension_numbers = #tpu.dot_dimension_numbers<[1], [1], [0], [0], [0, 0, 1, 0], [], []>} : vector<8x8xf32>, vector<8x8xf32>, vector<8x8xf32> -> vector<8x8xf32>
    %278 = vector.broadcast %273 : vector<1x8xf32> to vector<8x8xf32>
    %279 = arith.addf %277, %278 : vector<8x8xf32>
    %cst_106 = arith.constant dense<0xFF800000> : vector<8xf32>
    %280 = vector.multi_reduction <maximumf>, %279, %cst_106 [1] : vector<8x8xf32> to vector<8xf32>
    %281 = vector.shape_cast %280 : vector<8xf32> to vector<8x1xf32>
    %282 = vector.broadcast %281 : vector<8x1xf32> to vector<8x8xf32>
    %283 = arith.subf %279, %282 : vector<8x8xf32>
    %284 = math.exp %283 : vector<8x8xf32>
    %cst_107 = arith.constant dense<0.000000e+00> : vector<8xf32>
    %285 = vector.multi_reduction <add>, %284, %cst_107 [1] : vector<8x8xf32> to vector<8xf32>
    %286 = vector.shape_cast %285 : vector<8xf32> to vector<8x1xf32>
    %287 = tpu.reciprocal %286 {approx = true} : vector<8x1xf32> -> vector<8x1xf32>
    %288 = vector.broadcast %287 : vector<8x1xf32> to vector<8x8xf32>
    %289 = arith.mulf %284, %288 : vector<8x8xf32>
    %cst_108 = arith.constant dense<0.000000e+00> : vector<8x8xf32>
    %290 = tpu.matmul %289, %276, %cst_108 {dimension_numbers = #tpu.dot_dimension_numbers<[1], [0], [0], [1], [0, 0, 1, 1], [], []>} : vector<8x8xf32>, vector<8x8xf32>, vector<8x8xf32> -> vector<8x8xf32>
    %291 = vector.extract_strided_slice %270 {offsets = [0, 8], sizes = [8, 8], strides = [1, 1]} : vector<16x32xf32> to vector<8x8xf32>
    %292 = vector.extract_strided_slice %271 {offsets = [0, 8], sizes = [8, 8], strides = [1, 1]} : vector<16x32xf32> to vector<8x8xf32>
    %293 = vector.extract_strided_slice %272 {offsets = [0, 8], sizes = [8, 8], strides = [1, 1]} : vector<16x32xf32> to vector<8x8xf32>
    %cst_109 = arith.constant dense<0.000000e+00> : vector<8x8xf32>
    %294 = tpu.matmul %291, %292, %cst_109 {dimension_numbers = #tpu.dot_dimension_numbers<[1], [1], [0], [0], [0, 0, 1, 0], [], []>} : vector<8x8xf32>, vector<8x8xf32>, vector<8x8xf32> -> vector<8x8xf32>
    %295 = vector.broadcast %273 : vector<1x8xf32> to vector<8x8xf32>
    %296 = arith.addf %294, %295 : vector<8x8xf32>
    %cst_110 = arith.constant dense<0xFF800000> : vector<8xf32>
    %297 = vector.multi_reduction <maximumf>, %296, %cst_110 [1] : vector<8x8xf32> to vector<8xf32>
    %298 = vector.shape_cast %297 : vector<8xf32> to vector<8x1xf32>
    %299 = vector.broadcast %298 : vector<8x1xf32> to vector<8x8xf32>
    %300 = arith.subf %296, %299 : vector<8x8xf32>
    %301 = math.exp %300 : vector<8x8xf32>
    %cst_111 = arith.constant dense<0.000000e+00> : vector<8xf32>
    %302 = vector.multi_reduction <add>, %301, %cst_111 [1] : vector<8x8xf32> to vector<8xf32>
    %303 = vector.shape_cast %302 : vector<8xf32> to vector<8x1xf32>
    %304 = tpu.reciprocal %303 {approx = true} : vector<8x1xf32> -> vector<8x1xf32>
    %305 = vector.broadcast %304 : vector<8x1xf32> to vector<8x8xf32>
    %306 = arith.mulf %301, %305 : vector<8x8xf32>
    %cst_112 = arith.constant dense<0.000000e+00> : vector<8x8xf32>
    %307 = tpu.matmul %306, %293, %cst_112 {dimension_numbers = #tpu.dot_dimension_numbers<[1], [0], [0], [1], [0, 0, 1, 1], [], []>} : vector<8x8xf32>, vector<8x8xf32>, vector<8x8xf32> -> vector<8x8xf32>
    %308 = vector.extract_strided_slice %270 {offsets = [0, 16], sizes = [8, 8], strides = [1, 1]} : vector<16x32xf32> to vector<8x8xf32>
    %309 = vector.extract_strided_slice %271 {offsets = [0, 16], sizes = [8, 8], strides = [1, 1]} : vector<16x32xf32> to vector<8x8xf32>
    %310 = vector.extract_strided_slice %272 {offsets = [0, 16], sizes = [8, 8], strides = [1, 1]} : vector<16x32xf32> to vector<8x8xf32>
    %cst_113 = arith.constant dense<0.000000e+00> : vector<8x8xf32>
    %311 = tpu.matmul %308, %309, %cst_113 {dimension_numbers = #tpu.dot_dimension_numbers<[1], [1], [0], [0], [0, 0, 1, 0], [], []>} : vector<8x8xf32>, vector<8x8xf32>, vector<8x8xf32> -> vector<8x8xf32>
    %312 = vector.broadcast %273 : vector<1x8xf32> to vector<8x8xf32>
    %313 = arith.addf %311, %312 : vector<8x8xf32>
    %cst_114 = arith.constant dense<0xFF800000> : vector<8xf32>
    %314 = vector.multi_reduction <maximumf>, %313, %cst_114 [1] : vector<8x8xf32> to vector<8xf32>
    %315 = vector.shape_cast %314 : vector<8xf32> to vector<8x1xf32>
    %316 = vector.broadcast %315 : vector<8x1xf32> to vector<8x8xf32>
    %317 = arith.subf %313, %316 : vector<8x8xf32>
    %318 = math.exp %317 : vector<8x8xf32>
    %cst_115 = arith.constant dense<0.000000e+00> : vector<8xf32>
    %319 = vector.multi_reduction <add>, %318, %cst_115 [1] : vector<8x8xf32> to vector<8xf32>
    %320 = vector.shape_cast %319 : vector<8xf32> to vector<8x1xf32>
    %321 = tpu.reciprocal %320 {approx = true} : vector<8x1xf32> -> vector<8x1xf32>
    %322 = vector.broadcast %321 : vector<8x1xf32> to vector<8x8xf32>
    %323 = arith.mulf %318, %322 : vector<8x8xf32>
    %cst_116 = arith.constant dense<0.000000e+00> : vector<8x8xf32>
    %324 = tpu.matmul %323, %310, %cst_116 {dimension_numbers = #tpu.dot_dimension_numbers<[1], [0], [0], [1], [0, 0, 1, 1], [], []>} : vector<8x8xf32>, vector<8x8xf32>, vector<8x8xf32> -> vector<8x8xf32>
    %325 = vector.extract_strided_slice %270 {offsets = [0, 24], sizes = [8, 8], strides = [1, 1]} : vector<16x32xf32> to vector<8x8xf32>
    %326 = vector.extract_strided_slice %271 {offsets = [0, 24], sizes = [8, 8], strides = [1, 1]} : vector<16x32xf32> to vector<8x8xf32>
    %327 = vector.extract_strided_slice %272 {offsets = [0, 24], sizes = [8, 8], strides = [1, 1]} : vector<16x32xf32> to vector<8x8xf32>
    %cst_117 = arith.constant dense<0.000000e+00> : vector<8x8xf32>
    %328 = tpu.matmul %325, %326, %cst_117 {dimension_numbers = #tpu.dot_dimension_numbers<[1], [1], [0], [0], [0, 0, 1, 0], [], []>} : vector<8x8xf32>, vector<8x8xf32>, vector<8x8xf32> -> vector<8x8xf32>
    %329 = vector.broadcast %273 : vector<1x8xf32> to vector<8x8xf32>
    %330 = arith.addf %328, %329 : vector<8x8xf32>
    %cst_118 = arith.constant dense<0xFF800000> : vector<8xf32>
    %331 = vector.multi_reduction <maximumf>, %330, %cst_118 [1] : vector<8x8xf32> to vector<8xf32>
    %332 = vector.shape_cast %331 : vector<8xf32> to vector<8x1xf32>
    %333 = vector.broadcast %332 : vector<8x1xf32> to vector<8x8xf32>
    %334 = arith.subf %330, %333 : vector<8x8xf32>
    %335 = math.exp %334 : vector<8x8xf32>
    %cst_119 = arith.constant dense<0.000000e+00> : vector<8xf32>
    %336 = vector.multi_reduction <add>, %335, %cst_119 [1] : vector<8x8xf32> to vector<8xf32>
    %337 = vector.shape_cast %336 : vector<8xf32> to vector<8x1xf32>
    %338 = tpu.reciprocal %337 {approx = true} : vector<8x1xf32> -> vector<8x1xf32>
    %339 = vector.broadcast %338 : vector<8x1xf32> to vector<8x8xf32>
    %340 = arith.mulf %335, %339 : vector<8x8xf32>
    %cst_120 = arith.constant dense<0.000000e+00> : vector<8x8xf32>
    %341 = tpu.matmul %340, %327, %cst_120 {dimension_numbers = #tpu.dot_dimension_numbers<[1], [0], [0], [1], [0, 0, 1, 1], [], []>} : vector<8x8xf32>, vector<8x8xf32>, vector<8x8xf32> -> vector<8x8xf32>
    %342 = tpu.concatenate %290, %307, %324, %341 in 1 : vector<8x8xf32>, vector<8x8xf32>, vector<8x8xf32>, vector<8x8xf32> -> vector<8x32xf32>
    %343 = vector.extract_strided_slice %27 {offsets = [1, 0], sizes = [1, 8], strides = [1, 1]} : vector<2x8xf32> to vector<1x8xf32>
    %344 = vector.extract_strided_slice %270 {offsets = [8, 0], sizes = [8, 8], strides = [1, 1]} : vector<16x32xf32> to vector<8x8xf32>
    %345 = vector.extract_strided_slice %271 {offsets = [8, 0], sizes = [8, 8], strides = [1, 1]} : vector<16x32xf32> to vector<8x8xf32>
    %346 = vector.extract_strided_slice %272 {offsets = [8, 0], sizes = [8, 8], strides = [1, 1]} : vector<16x32xf32> to vector<8x8xf32>
    %cst_121 = arith.constant dense<0.000000e+00> : vector<8x8xf32>
    %347 = tpu.matmul %344, %345, %cst_121 {dimension_numbers = #tpu.dot_dimension_numbers<[1], [1], [0], [0], [0, 0, 1, 0], [], []>} : vector<8x8xf32>, vector<8x8xf32>, vector<8x8xf32> -> vector<8x8xf32>
    %348 = vector.broadcast %343 : vector<1x8xf32> to vector<8x8xf32>
    %349 = arith.addf %347, %348 : vector<8x8xf32>
    %cst_122 = arith.constant dense<0xFF800000> : vector<8xf32>
    %350 = vector.multi_reduction <maximumf>, %349, %cst_122 [1] : vector<8x8xf32> to vector<8xf32>
    %351 = vector.shape_cast %350 : vector<8xf32> to vector<8x1xf32>
    %352 = vector.broadcast %351 : vector<8x1xf32> to vector<8x8xf32>
    %353 = arith.subf %349, %352 : vector<8x8xf32>
    %354 = math.exp %353 : vector<8x8xf32>
    %cst_123 = arith.constant dense<0.000000e+00> : vector<8xf32>
    %355 = vector.multi_reduction <add>, %354, %cst_123 [1] : vector<8x8xf32> to vector<8xf32>
    %356 = vector.shape_cast %355 : vector<8xf32> to vector<8x1xf32>
    %357 = tpu.reciprocal %356 {approx = true} : vector<8x1xf32> -> vector<8x1xf32>
    %358 = vector.broadcast %357 : vector<8x1xf32> to vector<8x8xf32>
    %359 = arith.mulf %354, %358 : vector<8x8xf32>
    %cst_124 = arith.constant dense<0.000000e+00> : vector<8x8xf32>
    %360 = tpu.matmul %359, %346, %cst_124 {dimension_numbers = #tpu.dot_dimension_numbers<[1], [0], [0], [1], [0, 0, 1, 1], [], []>} : vector<8x8xf32>, vector<8x8xf32>, vector<8x8xf32> -> vector<8x8xf32>
    %361 = vector.extract_strided_slice %270 {offsets = [8, 8], sizes = [8, 8], strides = [1, 1]} : vector<16x32xf32> to vector<8x8xf32>
    %362 = vector.extract_strided_slice %271 {offsets = [8, 8], sizes = [8, 8], strides = [1, 1]} : vector<16x32xf32> to vector<8x8xf32>
    %363 = vector.extract_strided_slice %272 {offsets = [8, 8], sizes = [8, 8], strides = [1, 1]} : vector<16x32xf32> to vector<8x8xf32>
    %cst_125 = arith.constant dense<0.000000e+00> : vector<8x8xf32>
    %364 = tpu.matmul %361, %362, %cst_125 {dimension_numbers = #tpu.dot_dimension_numbers<[1], [1], [0], [0], [0, 0, 1, 0], [], []>} : vector<8x8xf32>, vector<8x8xf32>, vector<8x8xf32> -> vector<8x8xf32>
    %365 = vector.broadcast %343 : vector<1x8xf32> to vector<8x8xf32>
    %366 = arith.addf %364, %365 : vector<8x8xf32>
    %cst_126 = arith.constant dense<0xFF800000> : vector<8xf32>
    %367 = vector.multi_reduction <maximumf>, %366, %cst_126 [1] : vector<8x8xf32> to vector<8xf32>
    %368 = vector.shape_cast %367 : vector<8xf32> to vector<8x1xf32>
    %369 = vector.broadcast %368 : vector<8x1xf32> to vector<8x8xf32>
    %370 = arith.subf %366, %369 : vector<8x8xf32>
    %371 = math.exp %370 : vector<8x8xf32>
    %cst_127 = arith.constant dense<0.000000e+00> : vector<8xf32>
    %372 = vector.multi_reduction <add>, %371, %cst_127 [1] : vector<8x8xf32> to vector<8xf32>
    %373 = vector.shape_cast %372 : vector<8xf32> to vector<8x1xf32>
    %374 = tpu.reciprocal %373 {approx = true} : vector<8x1xf32> -> vector<8x1xf32>
    %375 = vector.broadcast %374 : vector<8x1xf32> to vector<8x8xf32>
    %376 = arith.mulf %371, %375 : vector<8x8xf32>
    %cst_128 = arith.constant dense<0.000000e+00> : vector<8x8xf32>
    %377 = tpu.matmul %376, %363, %cst_128 {dimension_numbers = #tpu.dot_dimension_numbers<[1], [0], [0], [1], [0, 0, 1, 1], [], []>} : vector<8x8xf32>, vector<8x8xf32>, vector<8x8xf32> -> vector<8x8xf32>
    %378 = vector.extract_strided_slice %270 {offsets = [8, 16], sizes = [8, 8], strides = [1, 1]} : vector<16x32xf32> to vector<8x8xf32>
    %379 = vector.extract_strided_slice %271 {offsets = [8, 16], sizes = [8, 8], strides = [1, 1]} : vector<16x32xf32> to vector<8x8xf32>
    %380 = vector.extract_strided_slice %272 {offsets = [8, 16], sizes = [8, 8], strides = [1, 1]} : vector<16x32xf32> to vector<8x8xf32>
    %cst_129 = arith.constant dense<0.000000e+00> : vector<8x8xf32>
    %381 = tpu.matmul %378, %379, %cst_129 {dimension_numbers = #tpu.dot_dimension_numbers<[1], [1], [0], [0], [0, 0, 1, 0], [], []>} : vector<8x8xf32>, vector<8x8xf32>, vector<8x8xf32> -> vector<8x8xf32>
    %382 = vector.broadcast %343 : vector<1x8xf32> to vector<8x8xf32>
    %383 = arith.addf %381, %382 : vector<8x8xf32>
    %cst_130 = arith.constant dense<0xFF800000> : vector<8xf32>
    %384 = vector.multi_reduction <maximumf>, %383, %cst_130 [1] : vector<8x8xf32> to vector<8xf32>
    %385 = vector.shape_cast %384 : vector<8xf32> to vector<8x1xf32>
    %386 = vector.broadcast %385 : vector<8x1xf32> to vector<8x8xf32>
    %387 = arith.subf %383, %386 : vector<8x8xf32>
    %388 = math.exp %387 : vector<8x8xf32>
    %cst_131 = arith.constant dense<0.000000e+00> : vector<8xf32>
    %389 = vector.multi_reduction <add>, %388, %cst_131 [1] : vector<8x8xf32> to vector<8xf32>
    %390 = vector.shape_cast %389 : vector<8xf32> to vector<8x1xf32>
    %391 = tpu.reciprocal %390 {approx = true} : vector<8x1xf32> -> vector<8x1xf32>
    %392 = vector.broadcast %391 : vector<8x1xf32> to vector<8x8xf32>
    %393 = arith.mulf %388, %392 : vector<8x8xf32>
    %cst_132 = arith.constant dense<0.000000e+00> : vector<8x8xf32>
    %394 = tpu.matmul %393, %380, %cst_132 {dimension_numbers = #tpu.dot_dimension_numbers<[1], [0], [0], [1], [0, 0, 1, 1], [], []>} : vector<8x8xf32>, vector<8x8xf32>, vector<8x8xf32> -> vector<8x8xf32>
    %395 = vector.extract_strided_slice %270 {offsets = [8, 24], sizes = [8, 8], strides = [1, 1]} : vector<16x32xf32> to vector<8x8xf32>
    %396 = vector.extract_strided_slice %271 {offsets = [8, 24], sizes = [8, 8], strides = [1, 1]} : vector<16x32xf32> to vector<8x8xf32>
    %397 = vector.extract_strided_slice %272 {offsets = [8, 24], sizes = [8, 8], strides = [1, 1]} : vector<16x32xf32> to vector<8x8xf32>
    %cst_133 = arith.constant dense<0.000000e+00> : vector<8x8xf32>
    %398 = tpu.matmul %395, %396, %cst_133 {dimension_numbers = #tpu.dot_dimension_numbers<[1], [1], [0], [0], [0, 0, 1, 0], [], []>} : vector<8x8xf32>, vector<8x8xf32>, vector<8x8xf32> -> vector<8x8xf32>
    %399 = vector.broadcast %343 : vector<1x8xf32> to vector<8x8xf32>
    %400 = arith.addf %398, %399 : vector<8x8xf32>
    %cst_134 = arith.constant dense<0xFF800000> : vector<8xf32>
    %401 = vector.multi_reduction <maximumf>, %400, %cst_134 [1] : vector<8x8xf32> to vector<8xf32>
    %402 = vector.shape_cast %401 : vector<8xf32> to vector<8x1xf32>
    %403 = vector.broadcast %402 : vector<8x1xf32> to vector<8x8xf32>
    %404 = arith.subf %400, %403 : vector<8x8xf32>
    %405 = math.exp %404 : vector<8x8xf32>
    %cst_135 = arith.constant dense<0.000000e+00> : vector<8xf32>
    %406 = vector.multi_reduction <add>, %405, %cst_135 [1] : vector<8x8xf32> to vector<8xf32>
    %407 = vector.shape_cast %406 : vector<8xf32> to vector<8x1xf32>
    %408 = tpu.reciprocal %407 {approx = true} : vector<8x1xf32> -> vector<8x1xf32>
    %409 = vector.broadcast %408 : vector<8x1xf32> to vector<8x8xf32>
    %410 = arith.mulf %405, %409 : vector<8x8xf32>
    %cst_136 = arith.constant dense<0.000000e+00> : vector<8x8xf32>
    %411 = tpu.matmul %410, %397, %cst_136 {dimension_numbers = #tpu.dot_dimension_numbers<[1], [0], [0], [1], [0, 0, 1, 1], [], []>} : vector<8x8xf32>, vector<8x8xf32>, vector<8x8xf32> -> vector<8x8xf32>
    %412 = tpu.concatenate %360, %377, %394, %411 in 1 : vector<8x8xf32>, vector<8x8xf32>, vector<8x8xf32>, vector<8x8xf32> -> vector<8x32xf32>
    %413 = tpu.concatenate %342, %412 in 0 : vector<8x32xf32>, vector<8x32xf32> -> vector<16x32xf32>
    %c1_137 = arith.constant 1 : index
    %c0_138 = arith.constant 0 : index
    %c0_139 = arith.constant 0 : index
    %414 = vector.load %arg6[%c1_137, %c0_138, %c0_139] : memref<2x32x32xf32, #tpu.memory_space<vmem>>, vector<1x32x32xf32>
    %415 = vector.shape_cast %414 : vector<1x32x32xf32> to vector<32x32xf32>
    %cst_140 = arith.constant dense<0.000000e+00> : vector<16x32xf32>
    %416 = tpu.matmul %413, %415, %cst_140 {dimension_numbers = #tpu.dot_dimension_numbers<[1], [0], [0], [1], [0, 0, 1, 1], [], []>} : vector<16x32xf32>, vector<32x32xf32>, vector<16x32xf32> -> vector<16x32xf32>
    %c1_141 = arith.constant 1 : index
    %c0_142 = arith.constant 0 : index
    %c0_143 = arith.constant 0 : index
    %417 = vector.load %arg7[%c1_141, %c0_142, %c0_143] : memref<2x1x32xf32, #tpu.memory_space<vmem>>, vector<1x1x32xf32>
    %418 = vector.shape_cast %417 : vector<1x1x32xf32> to vector<1x32xf32>
    %419 = vector.broadcast %418 : vector<1x32xf32> to vector<16x32xf32>
    %420 = arith.addf %416, %419 : vector<16x32xf32>
    %421 = arith.addf %420, %262 : vector<16x32xf32>
    %c1_144 = arith.constant 1 : index
    %c0_145 = arith.constant 0 : index
    %c0_146 = arith.constant 0 : index
    %422 = vector.load %arg8[%c1_144, %c0_145, %c0_146] : memref<2x1x32xf32, #tpu.memory_space<vmem>>, vector<1x1x32xf32>
    %423 = vector.shape_cast %422 : vector<1x1x32xf32> to vector<1x32xf32>
    %c1_147 = arith.constant 1 : index
    %c0_148 = arith.constant 0 : index
    %c0_149 = arith.constant 0 : index
    %424 = vector.load %arg9[%c1_147, %c0_148, %c0_149] : memref<2x1x32xf32, #tpu.memory_space<vmem>>, vector<1x1x32xf32>
    %425 = vector.shape_cast %424 : vector<1x1x32xf32> to vector<1x32xf32>
    %cst_150 = arith.constant dense<0.000000e+00> : vector<16xf32>
    %426 = vector.multi_reduction <add>, %421, %cst_150 [1] : vector<16x32xf32> to vector<16xf32>
    %427 = vector.shape_cast %426 : vector<16xf32> to vector<16x1xf32>
    %cst_151 = arith.constant 3.200000e+01 : f32
    %428 = vector.broadcast %cst_151 : f32 to vector<16x1xf32>
    %429 = arith.divf %427, %428 : vector<16x1xf32>
    %430 = vector.broadcast %429 : vector<16x1xf32> to vector<16x32xf32>
    %431 = arith.subf %421, %430 : vector<16x32xf32>
    %432 = arith.mulf %431, %431 : vector<16x32xf32>
    %cst_152 = arith.constant dense<0.000000e+00> : vector<16xf32>
    %433 = vector.multi_reduction <add>, %432, %cst_152 [1] : vector<16x32xf32> to vector<16xf32>
    %434 = vector.shape_cast %433 : vector<16xf32> to vector<16x1xf32>
    %cst_153 = arith.constant 3.200000e+01 : f32
    %435 = vector.broadcast %cst_153 : f32 to vector<16x1xf32>
    %436 = arith.divf %434, %435 : vector<16x1xf32>
    %cst_154 = arith.constant 9.99999996E-13 : f32
    %437 = vector.broadcast %cst_154 : f32 to vector<16x1xf32>
    %438 = arith.addf %436, %437 : vector<16x1xf32>
    %439 = math.rsqrt %438 : vector<16x1xf32>
    %440 = vector.broadcast %439 : vector<16x1xf32> to vector<16x32xf32>
    %441 = arith.mulf %431, %440 : vector<16x32xf32>
    %442 = vector.broadcast %423 : vector<1x32xf32> to vector<16x32xf32>
    %443 = arith.mulf %441, %442 : vector<16x32xf32>
    %444 = vector.broadcast %425 : vector<1x32xf32> to vector<16x32xf32>
    %445 = arith.addf %443, %444 : vector<16x32xf32>
    %c1_155 = arith.constant 1 : index
    %c0_156 = arith.constant 0 : index
    %c0_157 = arith.constant 0 : index
    %446 = vector.load %arg10[%c1_155, %c0_156, %c0_157] : memref<2x32x64xf32, #tpu.memory_space<vmem>>, vector<1x32x64xf32>
    %447 = vector.shape_cast %446 : vector<1x32x64xf32> to vector<32x64xf32>
    %cst_158 = arith.constant dense<0.000000e+00> : vector<16x64xf32>
    %448 = tpu.matmul %445, %447, %cst_158 {dimension_numbers = #tpu.dot_dimension_numbers<[1], [0], [0], [1], [0, 0, 1, 1], [], []>} : vector<16x32xf32>, vector<32x64xf32>, vector<16x64xf32> -> vector<16x64xf32>
    %c1_159 = arith.constant 1 : index
    %c0_160 = arith.constant 0 : index
    %c0_161 = arith.constant 0 : index
    %449 = vector.load %arg11[%c1_159, %c0_160, %c0_161] : memref<2x1x64xf32, #tpu.memory_space<vmem>>, vector<1x1x64xf32>
    %450 = vector.shape_cast %449 : vector<1x1x64xf32> to vector<1x64xf32>
    %451 = vector.broadcast %450 : vector<1x64xf32> to vector<16x64xf32>
    %452 = arith.addf %448, %451 : vector<16x64xf32>
    %cst_162 = arith.constant 5.000000e-01 : f32
    %453 = vector.broadcast %cst_162 : f32 to vector<16x64xf32>
    %454 = arith.mulf %453, %452 : vector<16x64xf32>
    %cst_163 = arith.constant 4.471500e-02 : f32
    %455 = vector.broadcast %cst_163 : f32 to vector<16x64xf32>
    %456 = arith.mulf %455, %452 : vector<16x64xf32>
    %457 = arith.mulf %456, %452 : vector<16x64xf32>
    %458 = arith.mulf %457, %452 : vector<16x64xf32>
    %459 = arith.addf %452, %458 : vector<16x64xf32>
    %cst_164 = arith.constant 0.797884583 : f32
    %460 = vector.broadcast %cst_164 : f32 to vector<16x64xf32>
    %461 = arith.mulf %460, %459 : vector<16x64xf32>
    %462 = math.tanh %461 : vector<16x64xf32>
    %cst_165 = arith.constant 1.000000e+00 : f32
    %463 = vector.broadcast %cst_165 : f32 to vector<16x64xf32>
    %464 = arith.addf %463, %462 : vector<16x64xf32>
    %465 = arith.mulf %454, %464 : vector<16x64xf32>
    %c1_166 = arith.constant 1 : index
    %c0_167 = arith.constant 0 : index
    %c0_168 = arith.constant 0 : index
    %466 = vector.load %arg12[%c1_166, %c0_167, %c0_168] : memref<2x64x32xf32, #tpu.memory_space<vmem>>, vector<1x64x32xf32>
    %467 = vector.shape_cast %466 : vector<1x64x32xf32> to vector<64x32xf32>
    %cst_169 = arith.constant dense<0.000000e+00> : vector<16x32xf32>
    %468 = tpu.matmul %465, %467, %cst_169 {dimension_numbers = #tpu.dot_dimension_numbers<[1], [0], [0], [1], [0, 0, 1, 1], [], []>} : vector<16x64xf32>, vector<64x32xf32>, vector<16x32xf32> -> vector<16x32xf32>
    %c1_170 = arith.constant 1 : index
    %c0_171 = arith.constant 0 : index
    %c0_172 = arith.constant 0 : index
    %469 = vector.load %arg13[%c1_170, %c0_171, %c0_172] : memref<2x1x32xf32, #tpu.memory_space<vmem>>, vector<1x1x32xf32>
    %470 = vector.shape_cast %469 : vector<1x1x32xf32> to vector<1x32xf32>
    %471 = vector.broadcast %470 : vector<1x32xf32> to vector<16x32xf32>
    %472 = arith.addf %468, %471 : vector<16x32xf32>
    %473 = arith.addf %472, %445 : vector<16x32xf32>
    %c1_173 = arith.constant 1 : index
    %c0_174 = arith.constant 0 : index
    %c0_175 = arith.constant 0 : index
    %474 = vector.load %arg14[%c1_173, %c0_174, %c0_175] : memref<2x1x32xf32, #tpu.memory_space<vmem>>, vector<1x1x32xf32>
    %475 = vector.shape_cast %474 : vector<1x1x32xf32> to vector<1x32xf32>
    %c1_176 = arith.constant 1 : index
    %c0_177 = arith.constant 0 : index
    %c0_178 = arith.constant 0 : index
    %476 = vector.load %arg15[%c1_176, %c0_177, %c0_178] : memref<2x1x32xf32, #tpu.memory_space<vmem>>, vector<1x1x32xf32>
    %477 = vector.shape_cast %476 : vector<1x1x32xf32> to vector<1x32xf32>
    %cst_179 = arith.constant dense<0.000000e+00> : vector<16xf32>
    %478 = vector.multi_reduction <add>, %473, %cst_179 [1] : vector<16x32xf32> to vector<16xf32>
    %479 = vector.shape_cast %478 : vector<16xf32> to vector<16x1xf32>
    %cst_180 = arith.constant 3.200000e+01 : f32
    %480 = vector.broadcast %cst_180 : f32 to vector<16x1xf32>
    %481 = arith.divf %479, %480 : vector<16x1xf32>
    %482 = vector.broadcast %481 : vector<16x1xf32> to vector<16x32xf32>
    %483 = arith.subf %473, %482 : vector<16x32xf32>
    %484 = arith.mulf %483, %483 : vector<16x32xf32>
    %cst_181 = arith.constant dense<0.000000e+00> : vector<16xf32>
    %485 = vector.multi_reduction <add>, %484, %cst_181 [1] : vector<16x32xf32> to vector<16xf32>
    %486 = vector.shape_cast %485 : vector<16xf32> to vector<16x1xf32>
    %cst_182 = arith.constant 3.200000e+01 : f32
    %487 = vector.broadcast %cst_182 : f32 to vector<16x1xf32>
    %488 = arith.divf %486, %487 : vector<16x1xf32>
    %cst_183 = arith.constant 9.99999996E-13 : f32
    %489 = vector.broadcast %cst_183 : f32 to vector<16x1xf32>
    %490 = arith.addf %488, %489 : vector<16x1xf32>
    %491 = math.rsqrt %490 : vector<16x1xf32>
    %492 = vector.broadcast %491 : vector<16x1xf32> to vector<16x32xf32>
    %493 = arith.mulf %483, %492 : vector<16x32xf32>
    %494 = vector.broadcast %475 : vector<1x32xf32> to vector<16x32xf32>
    %495 = arith.mulf %493, %494 : vector<16x32xf32>
    %496 = vector.broadcast %477 : vector<1x32xf32> to vector<16x32xf32>
    %497 = arith.addf %495, %496 : vector<16x32xf32>
    %c0_184 = arith.constant 0 : index
    %c0_185 = arith.constant 0 : index
    %498 = vector.load %arg16[%c0_184, %c0_185] : memref<16x32xf32, #tpu.memory_space<vmem>>, vector<16x32xf32>
    tpu.vector_store %arg16[%c0_184, %c0_185], %497 {strides = array<i32>} : memref<16x32xf32, #tpu.memory_space<vmem>>, vector<16x32xf32>,
    return
  }
}

</mosaic_0001>

<bundles_post_ra>
// kernel: sequence_processor_forward.1
= control target key start
LH: loop header
LB: loop body
LE: loop exit
PB: predicated region body
PF: predicated region fallthrough
CT: control target
= control target key end

     0   :  { %s5228_s0 = inlined_call_operand.vmem [shape: f32[16,32], index: 0, kind: input, shape index: {}]   ;;  %s5229_s1 = inlined_call_operand.vmem [shape: f32[2,8], index: 1, kind: input, shape index: {}]   ;;  %s5230_s2 = inlined_call_operand.vmem [shape: f32[1,32], index: 2, kind: input, shape index: {}]   ;;  %s5231_s3 = inlined_call_operand.vmem [shape: f32[1,32], index: 3, kind: input, shape index: {}]   ;;  %s5232_s4 = inlined_call_operand.vmem [shape: f32[2,32,96], index: 4, kind: input, shape index: {}]   ;;  %s5233_s5 = inlined_call_operand.vmem [shape: f32[2,1,96], index: 5, kind: input, shape index: {}]   ;;  %s5234_s6 = inlined_call_operand.vmem [shape: f32[2,32,32], index: 6, kind: input, shape index: {}]   ;;  %s5235_s7 = inlined_call_operand.vmem [shape: f32[2,1,32], index: 7, kind: input, shape index: {}]   ;;  %s5236_s8 = inlined_call_operand.vmem [shape: f32[2,1,32], index: 8, kind: input, shape index: {}]   ;;  %s5237_s9 = inlined_call_operand.vmem [shape: f32[2,1,32], index: 9, kind: input, shape index: {}]   ;;  %s5238_s10 = inlined_call_operand.vmem [shape: f32[2,32,64], index: 10, kind: input, shape index: {}]   ;;  %s5239_s11 = inlined_call_operand.vmem [shape: f32[2,1,64], index: 11, kind: input, shape index: {}]   ;;  %s5240_s12 = inlined_call_operand.vmem [shape: f32[2,64,32], index: 12, kind: input, shape index: {}]   ;;  %s5241_s13 = inlined_call_operand.vmem [shape: f32[2,1,32], index: 13, kind: input, shape index: {}]   ;;  %s5242_s14 = inlined_call_operand.vmem [shape: f32[2,1,32], index: 14, kind: input, shape index: {}]   ;;  %s5243_s15 = inlined_call_operand.vmem [shape: f32[2,1,32], index: 15, kind: input, shape index: {}]   ;;  %s5244_s16 = inlined_call_operand.hbm [shape: f32[16,32], index: 16, kind: output, shape index: {}]  }
   0x1   :  { %5258 = sst [smem:[#allocation5_spill]] %s5228_s0 }
   0x2   :  { %s5259_s23 = sld [smem:[#allocation5_spill]]  ;;  %vm58_vm0 = vcmask 261120  }
   0x8   :  { %v54_v0 = vld [vmem:[%s5259_s23] sm:$0xff]  ;;  %v55_v1 = vld [vmem:[%s5259_s23 + $0x8] sm:$0xff] }
   0x9   :  { %21 = vsyncpa [#allocation3], 0  ;;  %v59_v2 = vsel %vm58_vm0, %v54_v0, 0.0  ;;  %v62_v3 = vsel %vm58_vm0, %v55_v1, 0.0  ;;  %v105_v14 = vld [vmem:[%s5232_s4] sm:$0xff]  ;;  %v106_v15 = vld [vmem:[%s5232_s4 + $0x8] sm:$0xff]  ;;  %v197_v56 = vlaneseq }
   0xa   :  { %60 = vadd.xlane.f32.xlu0 %v59_v2  ;;  %v107_v16 = vld [vmem:[%s5232_s4 + $0x10] sm:$0xff]  ;;  %v4301_v17 = vpack.c.bf16 %v106_v15, %v105_v14  ;;  %v108_v18 = vld [vmem:[%s5232_s4 + $0x18] sm:$0xff]  ;;  %v3807_v27 = vld [vmem:[%s5230_s2] ss:$0 sm:$0xff]  ;;  %v4515_v36 = vmov 0.0   ;;  %vm4516_vm1 = vmmov 0  }
   0xb   :  { %v4305_v19 = vpack.c.bf16 %v108_v18, %v107_v16  ;;  %v3808_v29 = vld [vmem:[%s5231_s3] ss:$0 sm:$0xff]  ;;  %4058 = vmatprep.subr.mxu0 %v4515_v36  ;;  %4060 = vmatprep.mubr.msk.f32.mxu0 %vm4516_vm1, %v4515_v36  ;;  %s4517_s23 = smov 88   ;;  %s4518_s24 = smov 96   ;;  %vm204_vm2 = vcmask 64512   ;;  %v198_v59 = vshrl.u32 %v197_v56, 7 }
   0xc   :  { %4302 = vmatprep.subr.bf16.mxu1 %v4301_v17  ;;  %v3809_v37 = vld [vmem:[%s5233_s5] ss:$0 sm:$0xff]  ;;  %s4519_s25 = smov 120   ;;  %s4520_s26 = smov 112   ;;  %vm874_vm3 = vcmask 130048   ;;  %vm876_vm4 = vcmask 195584  }
   0xd   :  { %4304 = vmatpush3.bf16.msra.mxu1 %v4301_v17  ;;  %s4521_s27 = smov 80   ;;  %s4522_s28 = smov 104   ;;  %v102_v57 = vld [vmem:[%s5229_s1] sm:$0x3]  ;;  %v199_v61 = vsub.s32 0, %v198_v59  ;;  %vm1819_vm5 = vcmask 523264  }
   0xe   :  { %63 = vadd.xlane.f32.xlu0 %v62_v3  ;;  %4306 = vmatprep.subr.bf16.mxu1 %v4305_v19  ;;  %s4523_s29 = smov 72   ;;  %v103_v58 = vsub.f32 1.0, %v102_v57  ;;  %s4524_s1 = smov 64  }
   0xf   :  { %s5250_s17 = smov 48   ;;  %s5248_s18 = smov 40  }
  0x10   :  { %v104_v60 = vmul.f32 -10000.0, %v103_v58  ;;  %s5246_s19 = smov 56   ;;  %s5256_s20 = smov 8  }
  0x11   :  { %4308 = vmatpush3.bf16.msra.mxu1 %v4305_v19  ;;  %s5254_s30 = smov 16   ;;  %s5252_s21 = smov 24  }
  0x12   :  { %4048 = vmatprep.subr.mxu1 %v4515_v36  ;;  %v4737_v62 = vrot.slane %v104_v60, %v199_v61 }
  0x97   :  { %v61_v4 = vpop.xlane.xlu0 %60 }
  0x98   :  { %v66_v5 = vmul.f32 0.03125, %v61_v4 }
  0x9a   :  { %v68_v6 = vsub.f32 %v54_v0, %v66_v5 }
  0x9b   :  { %v64_v7 = vpop.xlane.xlu0 %63 }
  0x9c   :  { %v67_v8 = vmul.f32 0.03125, %v64_v7  ;;  %v70_v9 = vmul.f32 %v68_v6, %v68_v6 }
  0x9e   :  { %v69_v10 = vsub.f32 %v55_v1, %v67_v8  ;;  %v72_v11 = vsel %vm58_vm0, %v70_v9, 0.0 }
  0x9f   :  { %73 = vadd.xlane.f32.xlu1 %v72_v11 }
  0xa0   :  { %v71_v12 = vmul.f32 %v69_v10, %v69_v10 }
  0xa2   :  { %v75_v13 = vsel %vm58_vm0, %v71_v12, 0.0 }
  0xa3   :  { %76 = vadd.xlane.f32.xlu1 %v75_v13 }
 0x12c   :  { %v74_v20 = vpop.xlane.xlu1 %73 }
 0x12d   :  { %v78_v21 = vmul.f32 0.03125, %v74_v20 }
 0x12f   :  { %v80_v22 = vadd.f32 1e-12, %v78_v21 }
 0x130   :  { %v77_v23 = vpop.xlane.xlu1 %76 }
 0x131   :  { %4399 = vrsqrt.f32 %v80_v22  ;;  %v79_v24 = vmul.f32 0.03125, %v77_v23 }
 0x133   :  { %v81_v25 = vadd.f32 1e-12, %v79_v24 }
 0x135   :  { %4401 = vrsqrt.f32 %v81_v25 }
 0x13b   :  { %v4400_v26 = vpop.eup %4399 }
 0x13c   :  { %v84_v28 = vmul.f32 %v4400_v26, %v68_v6 }
 0x13e   :  { %v92_v30 = vmul.f32 %v3807_v27, %v84_v28 }
 0x13f   :  { %v4402_v31 = vpop.eup %4401 }
 0x140   :  { %v85_v32 = vmul.f32 %v4402_v31, %v69_v10  ;;  %v4646_v33 = vadd.f32 %v3808_v29, %v92_v30  ;;  %v880_v10 = vsub.s32 1, %v198_v59 }
 0x142   :  { %v93_v34 = vmul.f32 %v3807_v27, %v85_v32  ;;  %4045 = vmatprep.mubr.msk.f32.mxu1 %vm58_vm0, %v4646_v33  ;;  %v4749_v15 = vrot.slane %v104_v60, %v880_v10 }
 0x144   :  { %v4650_v35 = vadd.f32 %v3808_v29, %v93_v34 }
 0x146   :  { %4046 = vmatmul.mubr.msk.f32.vlgmr.msra.gmra.mrb[0].mxu1 %vm58_vm0, %v4650_v35 }
 0x147   :  { %4050 = vmatprep.mubr.msk.f32.mxu1 %vm4516_vm1, %v4515_v36 }
 0x219   :  { %v4047_v38 = vpop.f32.mrb[0].mxu1 }
 0x21a   :  { %v188_v39 = vpop.f32.mrb[1].mxu1  ;;  %v4677_v41 = vadd.f32 %v4047_v38, %v3809_v37 }
 0x21b   :  { %v4663_v40 = vadd.f32 %v3809_v37, %v188_v39 }
 0x21d   :  { %368 = vrot.lane.b32.xlu1 %v4663_v40, %s4517_s23  ;;  %202 = vrot.lane.b32.xlu0 %v4663_v40, %s4518_s24 }
 0x221   :  { %366 = vrot.lane.b32.xlu1 %v4663_v40, %s4519_s25  ;;  %531 = vrot.lane.b32.xlu0 %v4663_v40, %s4520_s26 }
 0x225   :  { %533 = vrot.lane.b32.xlu1 %v4663_v40, %s4521_s27  ;;  %696 = vrot.lane.b32.xlu0 %v4663_v40, %s4522_s28 }
 0x229   :  { %698 = vrot.lane.b32.xlu1 %v4663_v40, %s4523_s29  ;;  %1048 = vrot.lane.b32.xlu0 %v4677_v41, %s4517_s23 }
 0x22d   :  { %883 = vrot.lane.b32.xlu1 %v4677_v41, %s4518_s24  ;;  %1213 = vrot.lane.b32.xlu0 %v4677_v41, %s4521_s27 }
 0x231   :  { %1046 = vrot.lane.b32.xlu1 %v4677_v41, %s4519_s25  ;;  %1378 = vrot.lane.b32.xlu0 %v4677_v41, %s4523_s29 }
 0x235   :  { %1211 = vrot.lane.b32.xlu1 %v4677_v41, %s4520_s26 }
 0x239   :  { %1376 = vrot.lane.b32.xlu1 %v4677_v41, %s4522_s28 }
 0x28f   :  { %v369_v42 = vpop.permute.xlu1 %368  ;;  %v203_v43 = vpop.permute.xlu0 %202 }
 0x290   :  { %4049 = vmatpush3.xpose.msk.msra.mxu1 %vm204_vm2, %v203_v43  ;;  %4059 = vmatpush3.xpose.msk.msra.mxu0 %vm204_vm2, %v369_v42 }
 0x291   :  { %4068 = vmatprep.subr.mxu0 %v4515_v36  ;;  %4053 = vmatprep.subr.mxu1 %v4515_v36 }
 0x293   :  { %v367_v44 = vpop.permute.xlu1 %366  ;;  %4051 = vmatmul.mubr.msk.f32.vlgmr.msra.gmra.mrb[2].mxu1 %vm204_vm2, %v4663_v40  ;;  %v532_v45 = vpop.permute.xlu0 %531 }
 0x294   :  { %4061 = vmatmul.mubr.msk.f32.vlgmr.msra.gmra.mrb[0].mxu0 %vm204_vm2, %v367_v44  ;;  %4055 = vmatprep.mubr.msk.f32.mxu1 %vm4516_vm1, %v4515_v36 }
 0x295   :  { %4070 = vmatprep.mubr.msk.f32.mxu0 %vm4516_vm1, %v4515_v36 }
 0x297   :  { %v534_v46 = vpop.permute.xlu1 %533  ;;  %v697_v47 = vpop.permute.xlu0 %696 }
 0x298   :  { %4069 = vmatpush3.xpose.msk.msra.mxu0 %vm204_vm2, %v534_v46 }
 0x299   :  { %4078 = vmatprep.subr.mxu0 %v4515_v36 }
 0x29b   :  { %v699_v48 = vpop.permute.xlu1 %698  ;;  %4071 = vmatmul.mubr.msk.f32.vlgmr.msra.gmra.mrb[2].mxu0 %vm204_vm2, %v532_v45  ;;  %v1049_v49 = vpop.permute.xlu0 %1048 }
 0x29c   :  { %4079 = vmatpush3.xpose.msk.msra.mxu0 %vm204_vm2, %v699_v48  ;;  %4080 = vmatprep.mubr.msk.f32.mxu0 %vm4516_vm1, %v4515_v36 }
 0x29d   :  { %4088 = vmatprep.subr.mxu0 %v4515_v36 }
 0x29f   :  { %v884_v50 = vpop.permute.xlu1 %883  ;;  %4081 = vmatmul.mubr.msk.f32.vlgmr.msra.gmra.mrb[4].mxu0 %vm204_vm2, %v697_v47  ;;  %v1214_v52 = vpop.permute.xlu0 %1213 }
 0x2a0   :  { %4089 = vmatpush3.xpose.msk.msra.mxu0 %vm204_vm2, %v884_v50  ;;  %4090 = vmatprep.mubr.msk.f32.mxu0 %vm4516_vm1, %v4515_v36 }
 0x2a1   :  { %4098 = vmatprep.subr.mxu0 %v4515_v36 }
 0x2a3   :  { %v1047_v51 = vpop.permute.xlu1 %1046  ;;  %4091 = vmatmul.mubr.msk.f32.vlgmr.msra.gmra.mrb[6].mxu0 %vm204_vm2, %v4677_v41  ;;  %v1379_v54 = vpop.permute.xlu0 %1378 }
 0x2a4   :  { %4099 = vmatpush3.xpose.msk.msra.mxu0 %vm204_vm2, %v1049_v49  ;;  %4100 = vmatprep.mubr.msk.f32.mxu0 %vm4516_vm1, %v4515_v36 }
 0x2a5   :  { %4108 = vmatprep.subr.mxu0 %v4515_v36 }
 0x2a7   :  { %4101 = vmatmul.mubr.msk.f32.vlgmr.msra.gmra.mrb[8].mxu0 %vm204_vm2, %v1047_v51  ;;  %v1212_v53 = vpop.permute.xlu1 %1211 }
 0x2a8   :  { %4109 = vmatpush3.xpose.msk.msra.mxu0 %vm204_vm2, %v1214_v52  ;;  %4110 = vmatprep.mubr.msk.f32.mxu0 %vm4516_vm1, %v4515_v36 }
 0x2a9   :  { %4118 = vmatprep.subr.mxu0 %v4515_v36 }
 0x2ab   :  { %4111 = vmatmul.mubr.msk.f32.vlgmr.msra.gmra.mrb[10].mxu0 %vm204_vm2, %v1212_v53  ;;  %v1377_v55 = vpop.permute.xlu1 %1376 }
 0x2ac   :  { %4119 = vmatpush3.xpose.msk.msra.mxu0 %vm204_vm2, %v1379_v54  ;;  %4120 = vmatprep.mubr.msk.f32.mxu0 %vm4516_vm1, %v4515_v36 }
 0x2af   :  { %4121 = vmatmul.mubr.msk.f32.vlgmr.msra.gmra.mrb[12].mxu0 %vm204_vm2, %v1377_v55 }
 0x366   :  { %v275_v63 = vpop.f32.mrb[2].mxu1 }
 0x367   :  { %v276_v0 = vadd.f32 %v275_v63, %v4737_v62  ;;  %v4052_v1 = vpop.f32.mrb[3].mxu1  ;;  %v440_v2 = vpop.f32.mrb[0].mxu0 }
 0x368   :  { %v441_v3 = vadd.f32 %v440_v2, %v4737_v62  ;;  %v4062_v4 = vpop.f32.mrb[1].mxu0 }
 0x369   :  { %v279_v5 = vsel %vm204_vm2, %v276_v0, -inf }
 0x36a   :  { %280 = vmax.xlane.f32.xlu0 %v279_v5  ;;  %v444_v6 = vsel %vm204_vm2, %v441_v3, -inf }
 0x36b   :  { %445 = vmax.xlane.f32.xlu1 %v444_v6 }
 0x36e   :  { %v605_v7 = vpop.f32.mrb[2].mxu0 }
 0x36f   :  { %v4744_v8 = vadd.f32 %v605_v7, %v4737_v62  ;;  %v4072_v9 = vpop.f32.mrb[3].mxu0 }
 0x371   :  { %v609_v11 = vsel %vm204_vm2, %v4744_v8, -inf }
 0x372   :  { %610 = vmax.xlane.f32.xlu0 %v609_v11  ;;  %v770_v12 = vpop.f32.mrb[4].mxu0 }
 0x373   :  { %v771_v13 = vadd.f32 %v770_v12, %v4737_v62  ;;  %v4082_v14 = vpop.f32.mrb[5].mxu0 }
 0x375   :  { %v774_v16 = vsel %vm204_vm2, %v771_v13, -inf }
 0x376   :  { %775 = vmax.xlane.f32.xlu0 %v774_v16  ;;  %v955_v17 = vpop.f32.mrb[6].mxu0 }
 0x377   :  { %v956_v18 = vadd.f32 %v955_v17, %v4749_v15  ;;  %v4092_v19 = vpop.f32.mrb[7].mxu0 }
 0x379   :  { %v959_v20 = vsel %vm204_vm2, %v956_v18, -inf }
 0x37a   :  { %960 = vmax.xlane.f32.xlu0 %v959_v20  ;;  %v1120_v21 = vpop.f32.mrb[8].mxu0 }
 0x37b   :  { %v1121_v22 = vadd.f32 %v1120_v21, %v4749_v15  ;;  %v4102_v23 = vpop.f32.mrb[9].mxu0 }
 0x37d   :  { %v1124_v24 = vsel %vm204_vm2, %v1121_v22, -inf }
 0x37e   :  { %1125 = vmax.xlane.f32.xlu1 %v1124_v24  ;;  %v1285_v25 = vpop.f32.mrb[10].mxu0 }
 0x37f   :  { %v1286_v26 = vadd.f32 %v1285_v25, %v4749_v15  ;;  %v4112_v27 = vpop.f32.mrb[11].mxu0 }
 0x381   :  { %v1289_v28 = vsel %vm204_vm2, %v1286_v26, -inf }
 0x382   :  { %1290 = vmax.xlane.f32.xlu0 %v1289_v28  ;;  %v1450_v29 = vpop.f32.mrb[12].mxu0 }
 0x383   :  { %v4122_v30 = vpop.f32.mrb[13].mxu0  ;;  %v1451_v31 = vadd.f32 %v1450_v29, %v4749_v15 }
 0x385   :  { %v1454_v32 = vsel %vm204_vm2, %v1451_v31, -inf }
 0x38f   :  { %290 = vrot.lane.b32.xlu1 %v4663_v40, %s4524_s1 }
 0x3b3   :  { %1455 = vmax.xlane.f32.xlu1 %v1454_v32 }
 0x3c4   :  { %620 = vrot.lane.b32.xlu1 %v4663_v40, %s5250_s17 }
 0x3c8   :  { %785 = vrot.lane.b32.xlu1 %v4663_v40, %s5248_s18 }
 0x3cc   :  { %970 = vrot.lane.b32.xlu1 %v4677_v41, %s4524_s1 }
 0x3f7   :  { %v281_v34 = vpop.xlane.xlu0 %280 }
 0x3f8   :  { %v282_v37 = vsub.f32 %v276_v0, %v281_v34  ;;  %v446_v38 = vpop.xlane.xlu1 %445 }
 0x3f9   :  { %v447_v39 = vsub.f32 %v441_v3, %v446_v38 }
 0x3fa   :  { %v283_v42 = vmul.f32 1.442695, %v282_v37 }
 0x3fb   :  { %v448_v43 = vmul.f32 1.442695, %v447_v39 }
 0x3fc   :  { %4403 = vpow2.f32 %v283_v42 }
 0x3fd   :  { %4405 = vpow2.f32 %v448_v43 }
 0x3ff   :  { %v611_v44 = vpop.xlane.xlu0 %610 }
 0x400   :  { %v612_v56 = vsub.f32 %v4744_v8, %v611_v44 }
 0x402   :  { %v613_v58 = vmul.f32 1.442695, %v612_v56  ;;  %v1557_v56 = vld [vmem:[%s5234_s6 + $0x8] sm:$0xff] }
 0x403   :  { %v776_v45 = vpop.xlane.xlu0 %775 }
 0x404   :  { %v777_v46 = vsub.f32 %v771_v13, %v776_v45 }
 0x406   :  { %v4404_v47 = vpop.eup %4403  ;;  %v778_v48 = vmul.f32 1.442695, %v777_v46 }
 0x407   :  { %v4768_v49 = vpop.eup %4405  ;;  %v285_v50 = vsel %vm204_vm2, %v4404_v47, 0.0  ;;  %v961_v57 = vpop.xlane.xlu0 %960 }
 0x408   :  { %4407 = vpow2.f32 %v778_v48  ;;  %286 = vadd.xlane.f32.xlu0 %v285_v50  ;;  %v450_v51 = vsel %vm204_vm2, %v4768_v49, 0.0  ;;  %v962_v59 = vsub.f32 %v956_v18, %v961_v57 }
 0x409   :  { %451 = vadd.xlane.f32.xlu1 %v450_v51  ;;  %4409 = vpow2.f32 %v613_v58 }
 0x40a   :  { %v963_v61 = vmul.f32 1.442695, %v962_v59 }
 0x40b   :  { %v1126_v52 = vpop.xlane.xlu1 %1125 }
 0x40c   :  { %4411 = vpow2.f32 %v963_v61  ;;  %v1127_v0 = vsub.f32 %v1121_v22, %v1126_v52  ;;  %v1559_v61 = vld [vmem:[%s5234_s6 + $0x18] sm:$0xff] }
 0x40e   :  { %v1128_v2 = vmul.f32 1.442695, %v1127_v0 }
 0x40f   :  { %v291_v53 = vpop.permute.xlu1 %290  ;;  %v1291_v60 = vpop.xlane.xlu0 %1290 }
 0x410   :  { %4054 = vmatpush3.msra.mxu1 %v291_v53  ;;  %v1292_v63 = vsub.f32 %v1286_v26, %v1291_v60  ;;  %v1558_v60 = vld [vmem:[%s5234_s6 + $0x10] sm:$0xff] }
 0x411   :  { %4063 = vmatprep.subr.mxu1 %v4515_v36  ;;  %v4313_v0 = vpack.c.bf16 %v1559_v61, %v1558_v60 }
 0x412   :  { %v4774_v54 = vpop.eup %4407  ;;  %v1293_v1 = vmul.f32 1.442695, %v1292_v63 }
 0x413   :  { %v780_v55 = vsel %vm204_vm2, %v4774_v54, 0.0  ;;  %v4410_v3 = vpop.eup %4409 }
 0x414   :  { %781 = vadd.xlane.f32.xlu1 %v780_v55  ;;  %4413 = vpow2.f32 %v1293_v1  ;;  %v1556_v55 = vld [vmem:[%s5234_s6] sm:$0xff] }
 0x415   :  { %4415 = vpow2.f32 %v1128_v2  ;;  %v4309_v58 = vpack.c.bf16 %v1557_v56, %v1556_v55  ;;  %v3839_v56 = vld [vmem:[%s5236_s8] ss:$0 sm:$0xff] }
 0x416   :  { %v4412_v4 = vpop.eup %4411 }
 0x417   :  { %v965_v6 = vsel %vm204_vm2, %v4412_v4, 0.0  ;;  %4310 = vmatprep.subr.bf16.mxu0 %v4309_v58 }
 0x418   :  { %4312 = vmatpush3.bf16.msra.mxu0 %v4309_v58  ;;  %v3840_v58 = vld [vmem:[%s5237_s9] ss:$0 sm:$0xff] }
 0x419   :  { %4314 = vmatprep.subr.bf16.mxu0 %v4313_v0 }
 0x41c   :  { %4316 = vmatpush3.bf16.msra.mxu0 %v4313_v0 }
 0x41e   :  { %455 = vrot.lane.b32.xlu0 %v4663_v40, %s5246_s19  ;;  %v615_v40 = vsel %vm204_vm2, %v4410_v3, 0.0  ;;  %v4785_v7 = vpop.eup %4413 }
 0x41f   :  { %v1295_v10 = vsel %vm204_vm2, %v4785_v7, 0.0  ;;  %v4416_v11 = vpop.eup %4415 }
 0x420   :  { %v1130_v12 = vsel %vm204_vm2, %v4416_v11, 0.0 }
 0x425   :  { %1135 = vrot.lane.b32.xlu1 %v4677_v41, %s5246_s19 }
 0x43d   :  { %616 = vadd.xlane.f32.xlu0 %v615_v40 }
 0x440   :  { %v1456_v5 = vpop.xlane.xlu1 %1455 }
 0x441   :  { %v1457_v8 = vsub.f32 %v1451_v31, %v1456_v5  ;;  %966 = vadd.xlane.f32.xlu0 %v965_v6 }
 0x443   :  { %v1458_v9 = vmul.f32 1.442695, %v1457_v8 }
 0x444   :  { %v621_v16 = vpop.permute.xlu1 %620 }
 0x445   :  { %4417 = vpow2.f32 %v1458_v9  ;;  %1296 = vadd.xlane.f32.xlu0 %v1295_v10 }
 0x448   :  { %v786_v17 = vpop.permute.xlu1 %785 }
 0x449   :  { %1131 = vadd.xlane.f32.xlu1 %v1130_v12 }
 0x44c   :  { %v971_v18 = vpop.permute.xlu1 %970 }
 0x44f   :  { %v4790_v13 = vpop.eup %4417 }
 0x450   :  { %v1460_v14 = vsel %vm204_vm2, %v4790_v13, 0.0 }
 0x451   :  { %1461 = vadd.xlane.f32.xlu0 %v1460_v14 }
 0x45a   :  { %1465 = vrot.lane.b32.xlu1 %v4677_v41, %s5248_s18 }
 0x467   :  { %1300 = vrot.lane.b32.xlu0 %v4677_v41, %s5250_s17 }
 0x495   :  { %v287_v19 = vpop.xlane.xlu0 %286 }
 0x496   :  { %4419 = vrcp.f32 %v287_v19  ;;  %v452_v20 = vpop.xlane.xlu1 %451 }
 0x497   :  { %4421 = vrcp.f32 %v452_v20 }
 0x499   :  { %v456_v24 = vpop.permute.xlu0 %455 }
 0x4a0   :  { %v4420_v21 = vpop.eup %4419 }
 0x4a1   :  { %v289_v22 = vmul.f32 %v4420_v21, %v4404_v47  ;;  %v4422_v23 = vpop.eup %4421  ;;  %v782_v41 = vpop.xlane.xlu1 %781 }
 0x4a2   :  { %v454_v25 = vmul.f32 %v4422_v23, %v4768_v49 }
 0x4a3   :  { %4056 = vmatmul.mubr.msk.f32.vlgmr.msra.gmra.mrb[4].mxu1 %vm204_vm2, %v289_v22  ;;  %v3836_v22 = vld [vmem:[%s5235_s7] ss:$0 sm:$0xff] }
 0x4a4   :  { %4064 = vmatpush3.msra.mxu1 %v456_v24  ;;  %4065 = vmatprep.mubr.msk.f32.mxu1 %vm4516_vm1, %v4515_v36 }
 0x4a5   :  { %4073 = vmatprep.subr.mxu1 %v4515_v36  ;;  %v1136_v28 = vpop.permute.xlu1 %1135 }
 0x4a7   :  { %4066 = vmatmul.mubr.msk.f32.vlgmr.msra.gmra.mrb[6].mxu1 %vm204_vm2, %v454_v25 }
 0x4a8   :  { %4074 = vmatpush3.msra.mxu1 %v621_v16  ;;  %4075 = vmatprep.mubr.msk.f32.mxu1 %vm4516_vm1, %v4515_v36 }
 0x4a9   :  { %4083 = vmatprep.subr.mxu1 %v4515_v36 }
 0x4ca   :  { %v617_v26 = vpop.xlane.xlu0 %616 }
 0x4cb   :  { %4423 = vrcp.f32 %v617_v26 }
 0x4cc   :  { %4425 = vrcp.f32 %v782_v41 }
 0x4ce   :  { %v967_v27 = vpop.xlane.xlu0 %966 }
 0x4cf   :  { %4427 = vrcp.f32 %v967_v27 }
 0x4d2   :  { %v1297_v31 = vpop.xlane.xlu0 %1296 }
 0x4d5   :  { %v4424_v29 = vpop.eup %4423 }
 0x4d6   :  { %v619_v30 = vmul.f32 %v4424_v29, %v4410_v3  ;;  %v1132_v32 = vpop.xlane.xlu1 %1131  ;;  %v4426_v34 = vpop.eup %4425 }
 0x4d7   :  { %4429 = vrcp.f32 %v1132_v32  ;;  %v784_v37 = vmul.f32 %v4426_v34, %v4774_v54 }
 0x4d8   :  { %4076 = vmatmul.mubr.msk.f32.vlgmr.msra.gmra.mrb[8].mxu1 %vm204_vm2, %v619_v30  ;;  %4431 = vrcp.f32 %v1297_v31 }
 0x4d9   :  { %4084 = vmatpush3.msra.mxu1 %v786_v17  ;;  %4085 = vmatprep.mubr.msk.f32.mxu1 %vm4516_vm1, %v4515_v36  ;;  %v4428_v38 = vpop.eup %4427 }
 0x4da   :  { %4093 = vmatprep.subr.mxu1 %v4515_v36  ;;  %v969_v39 = vmul.f32 %v4428_v38, %v4412_v4  ;;  %v1466_v48 = vpop.permute.xlu1 %1465 }
 0x4dc   :  { %4086 = vmatmul.mubr.msk.f32.vlgmr.msra.gmra.mrb[10].mxu1 %vm204_vm2, %v784_v37 }
 0x4dd   :  { %4094 = vmatpush3.msra.mxu1 %v971_v18  ;;  %4095 = vmatprep.mubr.msk.f32.mxu1 %vm4516_vm1, %v4515_v36 }
 0x4de   :  { %v1462_v42 = vpop.xlane.xlu0 %1461  ;;  %4103 = vmatprep.subr.mxu1 %v4515_v36 }
 0x4df   :  { %4433 = vrcp.f32 %v1462_v42 }
 0x4e0   :  { %4096 = vmatmul.mubr.msk.f32.vlgmr.msra.gmra.mrb[12].mxu1 %vm204_vm2, %v969_v39 }
 0x4e1   :  { %v4430_v43 = vpop.eup %4429  ;;  %4104 = vmatpush3.msra.mxu1 %v1136_v28  ;;  %4105 = vmatprep.mubr.msk.f32.mxu1 %vm4516_vm1, %v4515_v36 }
 0x4e2   :  { %v1134_v44 = vmul.f32 %v4430_v43, %v4416_v11  ;;  %v1301_v45 = vpop.permute.xlu0 %1300  ;;  %4113 = vmatprep.subr.mxu1 %v4515_v36  ;;  %v4432_v46 = vpop.eup %4431 }
 0x4e3   :  { %v1299_v47 = vmul.f32 %v4432_v46, %v4785_v7  ;;  %v1696_v46 = vld [vmem:[%s5238_s10 + $0x10] sm:$0xff] }
 0x4e4   :  { %4106 = vmatmul.mubr.msk.f32.vlgmr.msra.gmra.mrb[14].mxu1 %vm204_vm2, %v1134_v44  ;;  %v1695_v44 = vld [vmem:[%s5238_s10 + $0x8] sm:$0xff] }
 0x4e5   :  { %4114 = vmatpush3.msra.mxu1 %v1301_v45  ;;  %4115 = vmatprep.mubr.msk.f32.mxu1 %vm4516_vm1, %v4515_v36 }
 0x4e6   :  { %4123 = vmatprep.subr.mxu1 %v4515_v36 }
 0x4e8   :  { %4116 = vmatmul.mubr.msk.f32.vlgmr.msra.gmra.mrb[16].mxu1 %vm204_vm2, %v1299_v47  ;;  %v1697_v47 = vld [vmem:[%s5238_s10 + $0x18] sm:$0xff] }
 0x4e9   :  { %v4434_v49 = vpop.eup %4433  ;;  %4124 = vmatpush3.msra.mxu1 %v1466_v48  ;;  %4125 = vmatprep.mubr.msk.f32.mxu1 %vm4516_vm1, %v4515_v36  ;;  %v4321_v48 = vpack.c.bf16 %v1697_v47, %v1696_v46 }
 0x4ea   :  { %v1464_v50 = vmul.f32 %v4434_v49, %v4790_v13 }
 0x4ec   :  { %4126 = vmatmul.mubr.msk.f32.vlgmr.msra.gmra.mrb[18].mxu1 %vm204_vm2, %v1464_v50 }
 0x576   :  { %v362_v51 = vpop.f32.mrb[4].mxu1 }
 0x577   :  { %v4057_v52 = vpop.f32.mrb[5].mxu1 }
 0x57a   :  { %v527_v53 = vpop.f32.mrb[6].mxu1 }
 0x57b   :  { %862 = vrot.lane.b32.xlu0 %v527_v53, %s5256_s20  ;;  %v4067_v54 = vpop.f32.mrb[7].mxu1 }
 0x5ab   :  { %v692_v57 = vpop.f32.mrb[8].mxu1 }
 0x5ac   :  { %866 = vrot.lane.b32.xlu1 %v692_v57, %s5254_s30  ;;  %v4077_v59 = vpop.f32.mrb[9].mxu1 }
 0x5af   :  { %v857_v63 = vpop.f32.mrb[10].mxu1 }
 0x5b0   :  { %870 = vrot.lane.b32.xlu1 %v857_v63, %s5252_s21  ;;  %v4087_v1 = vpop.f32.mrb[11].mxu1 }
 0x5b3   :  { %v1042_v2 = vpop.f32.mrb[12].mxu1 }
 0x5b4   :  { %v4097_v3 = vpop.f32.mrb[13].mxu1 }
 0x5b5   :  { %v1805_v3 = vld [vmem:[%s5240_s12 + $0x8] sm:$0xff] }
 0x5b7   :  { %v1207_v40 = vpop.f32.mrb[14].mxu1 }
 0x5b8   :  { %1542 = vrot.lane.b32.xlu0 %v1207_v40, %s5256_s20  ;;  %v4107_v4 = vpop.f32.mrb[15].mxu1 }
 0x5b9   :  { %v1806_v4 = vld [vmem:[%s5240_s12 + $0x10] sm:$0xff] }
 0x5bb   :  { %v1372_v5 = vpop.f32.mrb[16].mxu1 }
 0x5bc   :  { %1546 = vrot.lane.b32.xlu0 %v1372_v5, %s5254_s30  ;;  %v4117_v6 = vpop.f32.mrb[17].mxu1  ;;  %v1807_v5 = vld [vmem:[%s5240_s12 + $0x18] sm:$0xff]  ;;  %s5265_s30 = smov 24  }
 0x5bd   :  { %v4329_v6 = vpack.c.bf16 %v1807_v5, %v1806_v4 }
 0x5bf   :  { %v1537_v7 = vpop.f32.mrb[18].mxu1 }
 0x5c0   :  { %1550 = vrot.lane.b32.xlu1 %v1537_v7, %s5252_s21  ;;  %v4127_v8 = vpop.f32.mrb[19].mxu1  ;;  %v1808_v7 = vld [vmem:[%s5240_s12 + $0x20] sm:$0xff] }
 0x5c1   :  { %v1809_v8 = vld [vmem:[%s5240_s12 + $0x28] sm:$0xff] }
 0x5ed   :  { %v863_v9 = vpop.permute.xlu0 %862 }
 0x5ee   :  { %v873_v11 = vsel %vm204_vm2, %v362_v51, %v863_v9  ;;  %v4333_v9 = vpack.c.bf16 %v1809_v8, %v1808_v7  ;;  %v3847_v7 = vld [vmem:[%s5242_s14] ss:$0 sm:$0xff] }
 0x61e   :  { %v867_v10 = vpop.permute.xlu1 %866 }
 0x61f   :  { %v875_v12 = vsel %vm874_vm3, %v873_v11, %v867_v10  ;;  %v1810_v10 = vld [vmem:[%s5240_s12 + $0x30] sm:$0xff]  ;;  %v1811_v11 = vld [vmem:[%s5240_s12 + $0x38] sm:$0xff] }
 0x622   :  { %v871_v13 = vpop.permute.xlu1 %870 }
 0x623   :  { %v877_v14 = vsel %vm876_vm4, %v875_v12, %v871_v13  ;;  %v4337_v12 = vpack.c.bf16 %v1811_v11, %v1810_v10  ;;  %v3841_v13 = vld [vmem:[%s5239_s11] ss:$0 sm:$0xff] }
 0x624   :  { %4136 = vmatprep.mubr.msk.f32.mxu0 %vm58_vm0, %v877_v14  ;;  %v3848_v11 = vld [vmem:[%s5243_s15] ss:$0 sm:$0xff] }
 0x62a   :  { %v1543_v16 = vpop.permute.xlu0 %1542 }
 0x62b   :  { %v1553_v18 = vsel %vm204_vm2, %v1042_v2, %v1543_v16  ;;  %v1804_v2 = vld [vmem:[%s5240_s12] sm:$0xff] }
 0x62c   :  { %v4325_v40 = vpack.c.bf16 %v1805_v3, %v1804_v2 }
 0x62e   :  { %v1547_v17 = vpop.permute.xlu0 %1546  ;;  %4326 = vmatprep.subr.bf16.mxu0 %v4325_v40 }
 0x62f   :  { %v1554_v19 = vsel %vm874_vm3, %v1553_v18, %v1547_v17 }
 0x632   :  { %v1551_v20 = vpop.permute.xlu1 %1550 }
 0x633   :  { %v1555_v21 = vsel %vm876_vm4, %v1554_v19, %v1551_v20 }
 0x634   :  { %4137 = vmatmul.mubr.msk.f32.vlgmr.msra.gmra.mrb[14].mxu0 %vm58_vm0, %v1555_v21 }
 0x635   :  { %4328 = vmatpush3.bf16.msra.mxu0 %v4325_v40 }
 0x636   :  { %4330 = vmatprep.subr.bf16.mxu0 %v4329_v6 }
 0x639   :  { %4332 = vmatpush3.bf16.msra.mxu0 %v4329_v6 }
 0x63a   :  { %4334 = vmatprep.subr.bf16.mxu0 %v4333_v9 }
 0x63d   :  { %4336 = vmatpush3.bf16.msra.mxu0 %v4333_v9 }
 0x63e   :  { %4338 = vmatprep.subr.bf16.mxu0 %v4337_v12 }
 0x641   :  { %4340 = vmatpush3.bf16.msra.mxu0 %v4337_v12 }
 0x642   :  { %4190 = vmatprep.subr.mxu0 %v4515_v36 }
 0x707   :  { %v4138_v23 = vpop.f32.mrb[14].mxu0 }
 0x708   :  { %v1645_v24 = vadd.f32 %v4138_v23, %v3836_v22  ;;  %v1639_v25 = vpop.f32.mrb[15].mxu0 }
 0x709   :  { %v1640_v41 = vadd.f32 %v3836_v22, %v1639_v25 }
 0x70a   :  { %v1649_v26 = vadd.f32 %v1645_v24, %v4650_v35 }
 0x70b   :  { %v1648_v27 = vadd.f32 %v1640_v41, %v4646_v33  ;;  %v1694_v33 = vld [vmem:[%s5238_s10] sm:$0xff] }
 0x70c   :  { %v1655_v28 = vsel %vm58_vm0, %v1649_v26, 0.0  ;;  %v4317_v45 = vpack.c.bf16 %v1695_v44, %v1694_v33 }
 0x70d   :  { %1656 = vadd.xlane.f32.xlu1 %v1655_v28  ;;  %v1652_v29 = vsel %vm58_vm0, %v1648_v27, 0.0 }
 0x70e   :  { %1653 = vadd.xlane.f32.xlu0 %v1652_v29  ;;  %4318 = vmatprep.subr.bf16.mxu1 %v4317_v45 }
 0x70f   :  { %4320 = vmatpush3.bf16.msra.mxu1 %v4317_v45 }
 0x710   :  { %4322 = vmatprep.subr.bf16.mxu1 %v4321_v48 }
 0x713   :  { %4324 = vmatpush3.bf16.msra.mxu1 %v4321_v48 }
 0x79a   :  { %v1657_v30 = vpop.xlane.xlu1 %1656 }
 0x79b   :  { %v1659_v31 = vmul.f32 0.03125, %v1657_v30  ;;  %v1654_v32 = vpop.xlane.xlu0 %1653 }
 0x79c   :  { %v1658_v34 = vmul.f32 0.03125, %v1654_v32 }
 0x79d   :  { %v1661_v37 = vsub.f32 %v1649_v26, %v1659_v31 }
 0x79e   :  { %v1660_v38 = vsub.f32 %v1648_v27, %v1658_v34 }
 0x79f   :  { %v1663_v43 = vmul.f32 %v1661_v37, %v1661_v37 }
 0x7a0   :  { %v1662_v39 = vmul.f32 %v1660_v38, %v1660_v38 }
 0x7a1   :  { %v1667_v35 = vsel %vm58_vm0, %v1663_v43, 0.0 }
 0x7a2   :  { %v1664_v42 = vsel %vm58_vm0, %v1662_v39, 0.0  ;;  %v3844_v39 = vld [vmem:[%s5241_s13] ss:$0 sm:$0xff] }
 0x7a3   :  { %1665 = vadd.xlane.f32.xlu0 %v1664_v42 }
 0x7a7   :  { %1668 = vadd.xlane.f32.xlu0 %v1667_v35 }
 0x830   :  { %v1666_v49 = vpop.xlane.xlu0 %1665 }
 0x831   :  { %v1670_v50 = vmul.f32 0.03125, %v1666_v49 }
 0x833   :  { %v1672_v51 = vadd.f32 1e-12, %v1670_v50 }
 0x834   :  { %v1669_v52 = vpop.xlane.xlu0 %1668 }
 0x835   :  { %4435 = vrsqrt.f32 %v1672_v51  ;;  %v1671_v53 = vmul.f32 0.03125, %v1669_v52 }
 0x837   :  { %v1673_v54 = vadd.f32 1e-12, %v1671_v53 }
 0x839   :  { %4437 = vrsqrt.f32 %v1673_v54 }
 0x83f   :  { %v4436_v55 = vpop.eup %4435 }
 0x840   :  { %v1676_v57 = vmul.f32 %v4436_v55, %v1660_v38 }
 0x842   :  { %v1684_v59 = vmul.f32 %v3839_v56, %v1676_v57 }
 0x843   :  { %v4438_v60 = vpop.eup %4437 }
 0x844   :  { %v1677_v61 = vmul.f32 %v4438_v60, %v1661_v37  ;;  %v1692_v63 = vadd.f32 %v3840_v58, %v1684_v59  ;;  %v3850_v59 = vld [vmem:[%s5232_s4 + $0x28] sm:$0xff] }
 0x846   :  { %v1685_v0 = vmul.f32 %v3839_v56, %v1677_v61  ;;  %4147 = vmatprep.mubr.msk.f32.mxu1 %vm58_vm0, %v1692_v63  ;;  %v3851_v61 = vld [vmem:[%s5232_s4 + $0x30] sm:$0xff] }
 0x848   :  { %v1693_v1 = vadd.f32 %v3840_v58, %v1685_v0  ;;  %v3849_v58 = vld [vmem:[%s5232_s4 + $0x20] sm:$0xff] }
 0x849   :  { %v4341_v60 = vpack.c.bf16 %v3850_v59, %v3849_v58 }
 0x84a   :  { %4148 = vmatmul.mubr.msk.f32.vlgmr.msra.gmra.mrb[20].mxu1 %vm58_vm0, %v1693_v1 }
 0x84b   :  { %4342 = vmatprep.subr.bf16.mxu1 %v4341_v60 }
 0x84c   :  { %4344 = vmatpush3.bf16.msra.mxu1 %v4341_v60 }
 0x91d   :  { %v4149_v14 = vpop.f32.mrb[20].mxu1 }
 0x91e   :  { %v1783_v16 = vadd.f32 %v4149_v14, %v3841_v13  ;;  %v1777_v17 = vpop.f32.mrb[21].mxu1 }
 0x91f   :  { %v1778_v18 = vadd.f32 %v3841_v13, %v1777_v17  ;;  %v3854_v17 = vld [vmem:[%s5233_s5 + $0x1] ss:$0 sm:$0xff]  ;;  %s5260_s5 = smov 48  }
 0x920   :  { %v1789_v19 = vmul.f32 0.044715, %v1783_v16  ;;  %v1787_v34 = vmul.f32 0.5, %v1783_v16 }
 0x921   :  { %v1788_v20 = vmul.f32 0.044715, %v1778_v18  ;;  %v1786_v31 = vmul.f32 0.5, %v1778_v18 }
 0x922   :  { %v1791_v21 = vmul.f32 %v1789_v19, %v1783_v16 }
 0x923   :  { %v1790_v22 = vmul.f32 %v1788_v20, %v1778_v18 }
 0x924   :  { %v1793_v23 = vmul.f32 %v1791_v21, %v1783_v16 }
 0x925   :  { %v1792_v24 = vmul.f32 %v1790_v22, %v1778_v18 }
 0x926   :  { %v1795_v25 = vadd.f32 %v1793_v23, %v1783_v16 }
 0x927   :  { %v1794_v41 = vadd.f32 %v1792_v24, %v1778_v18 }
 0x928   :  { %v1797_v26 = vmul.f32 0.7978846, %v1795_v25 }
 0x929   :  { %v1796_v27 = vmul.f32 0.7978846, %v1794_v41 }
 0x92a   :  { %4439 = vtanh.f32 %v1797_v26 }
 0x92b   :  { %4441 = vtanh.f32 %v1796_v27 }
 0x934   :  { %v4440_v28 = vpop.eup %4439 }
 0x935   :  { %v4442_v29 = vpop.eup %4441  ;;  %v1801_v30 = vadd.f32 1.0, %v4440_v28 }
 0x936   :  { %v1800_v32 = vadd.f32 1.0, %v4442_v29 }
 0x937   :  { %v1803_v38 = vmul.f32 %v1801_v30, %v1787_v34 }
 0x938   :  { %v1802_v37 = vmul.f32 %v1800_v32, %v1786_v31 }
 0x93a   :  { %4166 = vmatprep.mubr.msk.f32.mxu0 %vm1819_vm5, %v1802_v37 }
 0x93b   :  { %4167 = vmatmul.mubr.msk.f32.vlgmr.msra.gmra.mrb[16].mxu0 %vm1819_vm5, %v1803_v38 }
 0x93c   :  { %4192 = vmatprep.mubr.msk.f32.mxu0 %vm4516_vm1, %v4515_v36 }
 0xa0e   :  { %v4168_v42 = vpop.f32.mrb[16].mxu0 }
 0xa0f   :  { %v1898_v43 = vadd.f32 %v4168_v42, %v3844_v39  ;;  %v1892_v35 = vpop.f32.mrb[17].mxu0 }
 0xa10   :  { %v1893_v33 = vadd.f32 %v3844_v39, %v1892_v35 }
 0xa11   :  { %v1902_v44 = vadd.f32 %v1898_v43, %v1693_v1 }
 0xa12   :  { %v1901_v45 = vadd.f32 %v1893_v33, %v1692_v63  ;;  %v3852_v63 = vld [vmem:[%s5232_s4 + $0x38] sm:$0xff] }
 0xa13   :  { %v1908_v46 = vsel %vm58_vm0, %v1902_v44, 0.0  ;;  %v4345_v0 = vpack.c.bf16 %v3852_v63, %v3851_v61 }
 0xa14   :  { %1909 = vadd.xlane.f32.xlu1 %v1908_v46  ;;  %v1905_v47 = vsel %vm58_vm0, %v1901_v45, 0.0 }
 0xa15   :  { %1906 = vadd.xlane.f32.xlu0 %v1905_v47  ;;  %4346 = vmatprep.subr.bf16.mxu1 %v4345_v0 }
 0xa16   :  { %4348 = vmatpush3.bf16.msra.mxu1 %v4345_v0 }
 0xa17   :  { %4180 = vmatprep.subr.mxu1 %v4515_v36 }
 0xaa1   :  { %v1910_v48 = vpop.xlane.xlu1 %1909 }
 0xaa2   :  { %v1912_v49 = vmul.f32 0.03125, %v1910_v48  ;;  %v1907_v50 = vpop.xlane.xlu0 %1906 }
 0xaa3   :  { %v1911_v51 = vmul.f32 0.03125, %v1907_v50 }
 0xaa4   :  { %v1914_v52 = vsub.f32 %v1902_v44, %v1912_v49 }
 0xaa5   :  { %v1913_v53 = vsub.f32 %v1901_v45, %v1911_v51 }
 0xaa6   :  { %v1916_v54 = vmul.f32 %v1914_v52, %v1914_v52 }
 0xaa7   :  { %v1915_v55 = vmul.f32 %v1913_v53, %v1913_v53 }
 0xaa8   :  { %v1920_v56 = vsel %vm58_vm0, %v1916_v54, 0.0 }
 0xaa9   :  { %1921 = vadd.xlane.f32.xlu1 %v1920_v56  ;;  %v1917_v57 = vsel %vm58_vm0, %v1915_v55, 0.0 }
 0xaaa   :  { %1918 = vadd.xlane.f32.xlu0 %v1917_v57 }
 0xb36   :  { %v1922_v1 = vpop.xlane.xlu1 %1921 }
 0xb37   :  { %v1924_v2 = vmul.f32 0.03125, %v1922_v1  ;;  %v1919_v3 = vpop.xlane.xlu0 %1918 }
 0xb38   :  { %v1923_v40 = vmul.f32 0.03125, %v1919_v3 }
 0xb39   :  { %v1926_v4 = vadd.f32 1e-12, %v1924_v2 }
 0xb3a   :  { %v1925_v5 = vadd.f32 1e-12, %v1923_v40 }
 0xb3b   :  { %4443 = vrsqrt.f32 %v1926_v4 }
 0xb3c   :  { %4445 = vrsqrt.f32 %v1925_v5 }
 0xb45   :  { %v4444_v6 = vpop.eup %4443 }
 0xb46   :  { %v4446_v8 = vpop.eup %4445  ;;  %v1930_v9 = vmul.f32 %v4444_v6, %v1914_v52 }
 0xb47   :  { %v1929_v10 = vmul.f32 %v4446_v8, %v1913_v53 }
 0xb48   :  { %v1938_v12 = vmul.f32 %v3847_v7, %v1930_v9 }
 0xb49   :  { %v1937_v13 = vmul.f32 %v3847_v7, %v1929_v10 }
 0xb4a   :  { %v4945_v16 = vadd.f32 %v3848_v11, %v1938_v12 }
 0xb4b   :  { %v4943_v14 = vadd.f32 %v3848_v11, %v1937_v13 }
 0xb4d   :  { %4177 = vmatprep.mubr.msk.f32.mxu1 %vm58_vm0, %v4943_v14 }
 0xb4e   :  { %4178 = vmatmul.mubr.msk.f32.vlgmr.msra.gmra.mrb[22].mxu1 %vm58_vm0, %v4945_v16 }
 0xb4f   :  { %4182 = vmatprep.mubr.msk.f32.mxu1 %vm4516_vm1, %v4515_v36 }
 0xc21   :  { %v4179_v18 = vpop.f32.mrb[22].mxu1 }
 0xc22   :  { %v2032_v19 = vpop.f32.mrb[23].mxu1  ;;  %v4970_v21 = vadd.f32 %v4179_v18, %v3854_v17 }
 0xc23   :  { %v4956_v20 = vadd.f32 %v3854_v17, %v2032_v19 }
 0xc25   :  { %2207 = vrot.lane.b32.xlu1 %v4956_v20, %s4517_s23  ;;  %2042 = vrot.lane.b32.xlu0 %v4956_v20, %s4518_s24 }
 0xc29   :  { %2205 = vrot.lane.b32.xlu1 %v4956_v20, %s4519_s25  ;;  %2370 = vrot.lane.b32.xlu0 %v4956_v20, %s4520_s26 }
 0xc2d   :  { %2372 = vrot.lane.b32.xlu1 %v4956_v20, %s4521_s27  ;;  %2535 = vrot.lane.b32.xlu0 %v4956_v20, %s4522_s28 }
 0xc31   :  { %2537 = vrot.lane.b32.xlu1 %v4956_v20, %s4523_s29  ;;  %2881 = vrot.lane.b32.xlu0 %v4970_v21, %s4517_s23  ;;  %s5261_s23 = smov 40  }
 0xc35   :  { %2716 = vrot.lane.b32.xlu1 %v4970_v21, %s4518_s24  ;;  %3046 = vrot.lane.b32.xlu0 %v4970_v21, %s4521_s27  ;;  %s5262_s24 = smov 56  }
 0xc39   :  { %2879 = vrot.lane.b32.xlu1 %v4970_v21, %s4519_s25  ;;  %3211 = vrot.lane.b32.xlu0 %v4970_v21, %s4523_s29  ;;  %s5263_s25 = smov 8  }
 0xc3d   :  { %3044 = vrot.lane.b32.xlu1 %v4970_v21, %s4520_s26  ;;  %s4531_s26 = smov [#allocation2]  }
 0xc3e   :  { %s3796_s27 = sshll.u32 %s4531_s26, 4  ;;  %s3797_s27 = int_to_ptr.vmem [resolvable:$true] %s3796_s27 }
 0xc3f   :  { %p4496_p1 = scmp.lt.s32.totalorder %s3797_s27, %s3797_s27 }
 0xc41   :  { %3209 = vrot.lane.b32.xlu1 %v4970_v21, %s4522_s28  ;;  %s4491_s28 = scalar_lea.vmem %s3797_s27, 256 }
 0xc42   :  { %p4492_p0 = scmp.ne.s32.totalorder %s3797_s27, %s4491_s28  ;;  %p4497_p2 = scmp.lt.s32.totalorder %s4491_s28, %s4491_s28 }
 0xc44   :  { %p4498_p3 = por %p4497_p2, %p4496_p1 }
 0xc46   :  { %p4499_p4 = pnand %p4498_p3, %p4492_p0 }
 0xc97   :  { %v2208_v22 = vpop.permute.xlu1 %2207  ;;  %v2043_v23 = vpop.permute.xlu0 %2042 }
 0xc98   :  { %4181 = vmatpush3.xpose.msk.msra.mxu1 %vm204_vm2, %v2043_v23  ;;  %4191 = vmatpush3.xpose.msk.msra.mxu0 %vm204_vm2, %v2208_v22 }
 0xc99   :  { %4200 = vmatprep.subr.mxu0 %v4515_v36  ;;  %4185 = vmatprep.subr.mxu1 %v4515_v36 }
 0xc9b   :  { %v2206_v24 = vpop.permute.xlu1 %2205  ;;  %4183 = vmatmul.mubr.msk.f32.vlgmr.msra.gmra.mrb[24].mxu1 %vm204_vm2, %v4956_v20  ;;  %v2371_v25 = vpop.permute.xlu0 %2370 }
 0xc9c   :  { %4193 = vmatmul.mubr.msk.f32.vlgmr.msra.gmra.mrb[18].mxu0 %vm204_vm2, %v2206_v24  ;;  %4187 = vmatprep.mubr.msk.f32.mxu1 %vm4516_vm1, %v4515_v36 }
 0xc9d   :  { %4202 = vmatprep.mubr.msk.f32.mxu0 %vm4516_vm1, %v4515_v36 }
 0xc9f   :  { %v2373_v41 = vpop.permute.xlu1 %2372  ;;  %v2536_v26 = vpop.permute.xlu0 %2535 }
 0xca0   :  { %4201 = vmatpush3.xpose.msk.msra.mxu0 %vm204_vm2, %v2373_v41 }
 0xca1   :  { %4210 = vmatprep.subr.mxu0 %v4515_v36 }
 0xca3   :  { %v2538_v27 = vpop.permute.xlu1 %2537  ;;  %4203 = vmatmul.mubr.msk.f32.vlgmr.msra.gmra.mrb[20].mxu0 %vm204_vm2, %v2371_v25  ;;  %v2882_v28 = vpop.permute.xlu0 %2881 }
 0xca4   :  { %4211 = vmatpush3.xpose.msk.msra.mxu0 %vm204_vm2, %v2538_v27  ;;  %4212 = vmatprep.mubr.msk.f32.mxu0 %vm4516_vm1, %v4515_v36 }
 0xca5   :  { %4220 = vmatprep.subr.mxu0 %v4515_v36 }
 0xca7   :  { %v2717_v29 = vpop.permute.xlu1 %2716  ;;  %4213 = vmatmul.mubr.msk.f32.vlgmr.msra.gmra.mrb[22].mxu0 %vm204_vm2, %v2536_v26  ;;  %v3047_v31 = vpop.permute.xlu0 %3046 }
 0xca8   :  { %4221 = vmatpush3.xpose.msk.msra.mxu0 %vm204_vm2, %v2717_v29  ;;  %4222 = vmatprep.mubr.msk.f32.mxu0 %vm4516_vm1, %v4515_v36 }
 0xca9   :  { %4230 = vmatprep.subr.mxu0 %v4515_v36 }
 0xcab   :  { %v2880_v30 = vpop.permute.xlu1 %2879  ;;  %4223 = vmatmul.mubr.msk.f32.vlgmr.msra.gmra.mrb[24].mxu0 %vm204_vm2, %v4970_v21  ;;  %v3212_v34 = vpop.permute.xlu0 %3211 }
 0xcac   :  { %4231 = vmatpush3.xpose.msk.msra.mxu0 %vm204_vm2, %v2882_v28  ;;  %4232 = vmatprep.mubr.msk.f32.mxu0 %vm4516_vm1, %v4515_v36 }
 0xcad   :  { %4240 = vmatprep.subr.mxu0 %v4515_v36 }
 0xcaf   :  { %4233 = vmatmul.mubr.msk.f32.vlgmr.msra.gmra.mrb[26].mxu0 %vm204_vm2, %v2880_v30  ;;  %v3045_v32 = vpop.permute.xlu1 %3044 }
 0xcb0   :  { %4241 = vmatpush3.xpose.msk.msra.mxu0 %vm204_vm2, %v3047_v31  ;;  %4242 = vmatprep.mubr.msk.f32.mxu0 %vm4516_vm1, %v4515_v36 }
 0xcb1   :  { %4250 = vmatprep.subr.mxu0 %v4515_v36 }
 0xcb3   :  { %4243 = vmatmul.mubr.msk.f32.vlgmr.msra.gmra.mrb[28].mxu0 %vm204_vm2, %v3045_v32  ;;  %v3210_v37 = vpop.permute.xlu1 %3209 }
 0xcb4   :  { %4251 = vmatpush3.xpose.msk.msra.mxu0 %vm204_vm2, %v3212_v34  ;;  %4252 = vmatprep.mubr.msk.f32.mxu0 %vm4516_vm1, %v4515_v36 }
 0xcb7   :  { %4253 = vmatmul.mubr.msk.f32.vlgmr.msra.gmra.mrb[30].mxu0 %vm204_vm2, %v3210_v37 }
 0xd6e   :  { %v2114_v38 = vpop.f32.mrb[24].mxu1 }
 0xd6f   :  { %v2115_v39 = vadd.f32 %v2114_v38, %v4737_v62  ;;  %v4184_v42 = vpop.f32.mrb[25].mxu1  ;;  %v2279_v43 = vpop.f32.mrb[18].mxu0 }
 0xd70   :  { %v2280_v35 = vadd.f32 %v2279_v43, %v4737_v62  ;;  %v4194_v33 = vpop.f32.mrb[19].mxu0 }
 0xd71   :  { %v2118_v44 = vsel %vm204_vm2, %v2115_v39, -inf }
 0xd72   :  { %2119 = vmax.xlane.f32.xlu0 %v2118_v44  ;;  %v2283_v45 = vsel %vm204_vm2, %v2280_v35, -inf }
 0xd73   :  { %2284 = vmax.xlane.f32.xlu1 %v2283_v45 }
 0xd76   :  { %v2444_v46 = vpop.f32.mrb[20].mxu0 }
 0xd77   :  { %v5032_v47 = vadd.f32 %v2444_v46, %v4737_v62  ;;  %v4204_v48 = vpop.f32.mrb[21].mxu0 }
 0xd79   :  { %v2448_v49 = vsel %vm204_vm2, %v5032_v47, -inf }
 0xd7a   :  { %2449 = vmax.xlane.f32.xlu0 %v2448_v49  ;;  %v2609_v50 = vpop.f32.mrb[22].mxu0 }
 0xd7b   :  { %v2610_v51 = vadd.f32 %v2609_v50, %v4737_v62  ;;  %v4214_v52 = vpop.f32.mrb[23].mxu0 }
 0xd7d   :  { %v2613_v53 = vsel %vm204_vm2, %v2610_v51, -inf }
 0xd7e   :  { %2614 = vmax.xlane.f32.xlu0 %v2613_v53  ;;  %v2788_v54 = vpop.f32.mrb[24].mxu0 }
 0xd7f   :  { %v2789_v55 = vadd.f32 %v2788_v54, %v4749_v15  ;;  %v4224_v56 = vpop.f32.mrb[25].mxu0 }
 0xd81   :  { %v2792_v57 = vsel %vm204_vm2, %v2789_v55, -inf }
 0xd82   :  { %2793 = vmax.xlane.f32.xlu0 %v2792_v57  ;;  %v2953_v58 = vpop.f32.mrb[26].mxu0 }
 0xd83   :  { %v2954_v59 = vadd.f32 %v2953_v58, %v4749_v15  ;;  %v4234_v60 = vpop.f32.mrb[27].mxu0 }
 0xd85   :  { %v2957_v61 = vsel %vm204_vm2, %v2954_v59, -inf }
 0xd86   :  { %2958 = vmax.xlane.f32.xlu1 %v2957_v61  ;;  %v3118_v63 = vpop.f32.mrb[28].mxu0 }
 0xd87   :  { %v3119_v62 = vadd.f32 %v3118_v63, %v4749_v15  ;;  %v4244_v0 = vpop.f32.mrb[29].mxu0 }
 0xd89   :  { %v3122_v1 = vsel %vm204_vm2, %v3119_v62, -inf }
 0xd8a   :  { %3123 = vmax.xlane.f32.xlu0 %v3122_v1  ;;  %v3283_v2 = vpop.f32.mrb[30].mxu0 }
 0xd8b   :  { %v4254_v3 = vpop.f32.mrb[31].mxu0  ;;  %v3284_v40 = vadd.f32 %v3283_v2, %v4749_v15 }
 0xd8d   :  { %v3287_v4 = vsel %vm204_vm2, %v3284_v40, -inf }
 0xd97   :  { %2129 = vrot.lane.b32.xlu1 %v4956_v20, %s4524_s1 }
 0xdbb   :  { %3288 = vmax.xlane.f32.xlu1 %v3287_v4 }
 0xdcc   :  { %2459 = vrot.lane.b32.xlu1 %v4956_v20, %s5260_s5 }
 0xdd0   :  { %2624 = vrot.lane.b32.xlu1 %v4956_v20, %s5261_s23 }
 0xdd4   :  { %2803 = vrot.lane.b32.xlu1 %v4970_v21, %s4524_s1  ;;  %s5264_s1 = smov 16  }
 0xdff   :  { %v2120_v5 = vpop.xlane.xlu0 %2119 }
 0xe00   :  { %v2121_v6 = vsub.f32 %v2115_v39, %v2120_v5  ;;  %v2285_v7 = vpop.xlane.xlu1 %2284 }
 0xe01   :  { %v2286_v8 = vsub.f32 %v2280_v35, %v2285_v7 }
 0xe02   :  { %v2122_v9 = vmul.f32 1.442695, %v2121_v6 }
 0xe03   :  { %v2287_v10 = vmul.f32 1.442695, %v2286_v8 }
 0xe04   :  { %4447 = vpow2.f32 %v2122_v9 }
 0xe05   :  { %4449 = vpow2.f32 %v2287_v10 }
 0xe07   :  { %v2450_v15 = vpop.xlane.xlu0 %2449 }
 0xe08   :  { %v2451_v26 = vsub.f32 %v5032_v47, %v2450_v15 }
 0xe0a   :  { %v2452_v28 = vmul.f32 1.442695, %v2451_v26 }
 0xe0b   :  { %v2615_v11 = vpop.xlane.xlu0 %2614 }
 0xe0c   :  { %v2616_v12 = vsub.f32 %v2610_v51, %v2615_v11 }
 0xe0e   :  { %v4448_v13 = vpop.eup %4447  ;;  %v2617_v17 = vmul.f32 1.442695, %v2616_v12 }
 0xe0f   :  { %v5054_v18 = vpop.eup %4449  ;;  %v2124_v19 = vsel %vm204_vm2, %v4448_v13, 0.0  ;;  %v2794_v27 = vpop.xlane.xlu0 %2793 }
 0xe10   :  { %4451 = vpow2.f32 %v2617_v17  ;;  %2125 = vadd.xlane.f32.xlu0 %v2124_v19  ;;  %v2289_v22 = vsel %vm204_vm2, %v5054_v18, 0.0  ;;  %v2795_v29 = vsub.f32 %v2789_v55, %v2794_v27  ;;  %v3883_v27 = vld [vmem:[%s5234_s6 + $0x30] sm:$0xff] }
 0xe11   :  { %2290 = vadd.xlane.f32.xlu1 %v2289_v22  ;;  %4453 = vpow2.f32 %v2452_v28  ;;  %v3884_v28 = vld [vmem:[%s5234_s6 + $0x38] sm:$0xff] }
 0xe12   :  { %v2796_v31 = vmul.f32 1.442695, %v2795_v29 }
 0xe13   :  { %v2959_v23 = vpop.xlane.xlu1 %2958 }
 0xe14   :  { %4455 = vpow2.f32 %v2796_v31  ;;  %v2960_v34 = vsub.f32 %v2954_v59, %v2959_v23 }
 0xe16   :  { %v2961_v38 = vmul.f32 1.442695, %v2960_v34 }
 0xe17   :  { %v2130_v24 = vpop.permute.xlu1 %2129  ;;  %v3124_v30 = vpop.xlane.xlu0 %3123 }
 0xe18   :  { %4186 = vmatpush3.msra.mxu1 %v2130_v24  ;;  %v3125_v32 = vsub.f32 %v3119_v62, %v3124_v30  ;;  %v3881_v24 = vld [vmem:[%s5234_s6 + $0x20] sm:$0xff]  ;;  %v4353_v30 = vpack.c.bf16 %v3884_v28, %v3883_v27 }
 0xe19   :  { %4195 = vmatprep.subr.mxu1 %v4515_v36 }
 0xe1a   :  { %v5060_v25 = vpop.eup %4451  ;;  %v3126_v37 = vmul.f32 1.442695, %v3125_v32 }
 0xe1b   :  { %v2619_v41 = vsel %vm204_vm2, %v5060_v25, 0.0  ;;  %v4454_v39 = vpop.eup %4453 }
 0xe1c   :  { %2620 = vadd.xlane.f32.xlu1 %v2619_v41  ;;  %4457 = vpow2.f32 %v3126_v37 }
 0xe1d   :  { %4459 = vpow2.f32 %v2961_v38 }
 0xe1e   :  { %v4456_v42 = vpop.eup %4455 }
 0xe1f   :  { %v2798_v35 = vsel %vm204_vm2, %v4456_v42, 0.0 }
 0xe26   :  { %2294 = vrot.lane.b32.xlu0 %v4956_v20, %s5262_s24  ;;  %v2454_v20 = vsel %vm204_vm2, %v4454_v39, 0.0  ;;  %v5071_v33 = vpop.eup %4457 }
 0xe27   :  { %v3128_v46 = vsel %vm204_vm2, %v5071_v33, 0.0  ;;  %v4460_v47 = vpop.eup %4459 }
 0xe28   :  { %v2963_v48 = vsel %vm204_vm2, %v4460_v47, 0.0 }
 0xe2d   :  { %2968 = vrot.lane.b32.xlu1 %v4970_v21, %s5262_s24 }
 0xe45   :  { %2455 = vadd.xlane.f32.xlu0 %v2454_v20 }
 0xe48   :  { %v3289_v43 = vpop.xlane.xlu1 %3288 }
 0xe49   :  { %v3290_v44 = vsub.f32 %v3284_v40, %v3289_v43  ;;  %2799 = vadd.xlane.f32.xlu0 %v2798_v35 }
 0xe4b   :  { %v3291_v45 = vmul.f32 1.442695, %v3290_v44 }
 0xe4c   :  { %v2460_v51 = vpop.permute.xlu1 %2459 }
 0xe4d   :  { %4461 = vpow2.f32 %v3291_v45  ;;  %3129 = vadd.xlane.f32.xlu0 %v3128_v46 }
 0xe50   :  { %v2625_v52 = vpop.permute.xlu1 %2624 }
 0xe51   :  { %2964 = vadd.xlane.f32.xlu1 %v2963_v48 }
 0xe54   :  { %v2804_v53 = vpop.permute.xlu1 %2803 }
 0xe57   :  { %v5076_v49 = vpop.eup %4461 }
 0xe58   :  { %v3293_v50 = vsel %vm204_vm2, %v5076_v49, 0.0 }
 0xe59   :  { %3294 = vadd.xlane.f32.xlu0 %v3293_v50 }
 0xe62   :  { %3298 = vrot.lane.b32.xlu1 %v4970_v21, %s5261_s23 }
 0xe6f   :  { %3133 = vrot.lane.b32.xlu0 %v4970_v21, %s5260_s5 }
 0xe9d   :  { %v2126_v54 = vpop.xlane.xlu0 %2125 }
 0xe9e   :  { %4463 = vrcp.f32 %v2126_v54  ;;  %v2291_v55 = vpop.xlane.xlu1 %2290  ;;  %v3886_v54 = vld [vmem:[%s5235_s7 + $0x1] ss:$0 sm:$0xff] }
 0xe9f   :  { %4465 = vrcp.f32 %v2291_v55 }
 0xea1   :  { %v2295_v59 = vpop.permute.xlu0 %2294 }
 0xea8   :  { %v4464_v56 = vpop.eup %4463 }
 0xea9   :  { %v2128_v57 = vmul.f32 %v4464_v56, %v4448_v13  ;;  %v4466_v58 = vpop.eup %4465  ;;  %v2621_v21 = vpop.xlane.xlu1 %2620 }
 0xeaa   :  { %v2293_v60 = vmul.f32 %v4466_v58, %v5054_v18 }
 0xeab   :  { %4188 = vmatmul.mubr.msk.f32.vlgmr.msra.gmra.mrb[26].mxu1 %vm204_vm2, %v2128_v57 }
 0xeac   :  { %4196 = vmatpush3.msra.mxu1 %v2295_v59  ;;  %4197 = vmatprep.mubr.msk.f32.mxu1 %vm4516_vm1, %v4515_v36 }
 0xead   :  { %4205 = vmatprep.subr.mxu1 %v4515_v36  ;;  %v2969_v62 = vpop.permute.xlu1 %2968 }
 0xeaf   :  { %4198 = vmatmul.mubr.msk.f32.vlgmr.msra.gmra.mrb[28].mxu1 %vm204_vm2, %v2293_v60 }
 0xeb0   :  { %4206 = vmatpush3.msra.mxu1 %v2460_v51  ;;  %4207 = vmatprep.mubr.msk.f32.mxu1 %vm4516_vm1, %v4515_v36 }
 0xeb1   :  { %4215 = vmatprep.subr.mxu1 %v4515_v36 }
 0xed2   :  { %v2456_v61 = vpop.xlane.xlu0 %2455 }
 0xed3   :  { %4467 = vrcp.f32 %v2456_v61 }
 0xed4   :  { %4469 = vrcp.f32 %v2621_v21 }
 0xed6   :  { %v2800_v63 = vpop.xlane.xlu0 %2799 }
 0xed7   :  { %4471 = vrcp.f32 %v2800_v63 }
 0xeda   :  { %v3130_v2 = vpop.xlane.xlu0 %3129 }
 0xedd   :  { %v4468_v0 = vpop.eup %4467 }
 0xede   :  { %v2458_v1 = vmul.f32 %v4468_v0, %v4454_v39  ;;  %v2965_v3 = vpop.xlane.xlu1 %2964  ;;  %v4470_v40 = vpop.eup %4469 }
 0xedf   :  { %4473 = vrcp.f32 %v2965_v3  ;;  %v2623_v4 = vmul.f32 %v4470_v40, %v5060_v25  ;;  %v3882_v25 = vld [vmem:[%s5234_s6 + $0x28] sm:$0xff] }
 0xee0   :  { %4208 = vmatmul.mubr.msk.f32.vlgmr.msra.gmra.mrb[30].mxu1 %vm204_vm2, %v2458_v1  ;;  %4475 = vrcp.f32 %v3130_v2 }
 0xee1   :  { %4216 = vmatpush3.msra.mxu1 %v2625_v52  ;;  %4217 = vmatprep.mubr.msk.f32.mxu1 %vm4516_vm1, %v4515_v36  ;;  %v4472_v5 = vpop.eup %4471 }
 0xee2   :  { %4225 = vmatprep.subr.mxu1 %v4515_v36  ;;  %v2802_v6 = vmul.f32 %v4472_v5, %v4456_v42  ;;  %v3299_v12 = vpop.permute.xlu1 %3298 }
 0xee4   :  { %4218 = vmatmul.mubr.msk.f32.vlgmr.msra.gmra.mrb[32].mxu1 %vm204_vm2, %v2623_v4 }
 0xee5   :  { %4226 = vmatpush3.msra.mxu1 %v2804_v53  ;;  %4227 = vmatprep.mubr.msk.f32.mxu1 %vm4516_vm1, %v4515_v36 }
 0xee6   :  { %v3295_v7 = vpop.xlane.xlu0 %3294  ;;  %4235 = vmatprep.subr.mxu1 %v4515_v36 }
 0xee7   :  { %4477 = vrcp.f32 %v3295_v7 }
 0xee8   :  { %4228 = vmatmul.mubr.msk.f32.vlgmr.msra.gmra.mrb[34].mxu1 %vm204_vm2, %v2802_v6  ;;  %v3894_v6 = vld [vmem:[%s5238_s10 + $0x28] sm:$0xff] }
 0xee9   :  { %v4474_v8 = vpop.eup %4473  ;;  %4236 = vmatpush3.msra.mxu1 %v2969_v62  ;;  %4237 = vmatprep.mubr.msk.f32.mxu1 %vm4516_vm1, %v4515_v36 }
 0xeea   :  { %v2967_v9 = vmul.f32 %v4474_v8, %v4460_v47  ;;  %v3134_v10 = vpop.permute.xlu0 %3133  ;;  %4245 = vmatprep.subr.mxu1 %v4515_v36  ;;  %v4476_v15 = vpop.eup %4475  ;;  %v3895_v8 = vld [vmem:[%s5238_s10 + $0x30] sm:$0xff] }
 0xeeb   :  { %v3132_v11 = vmul.f32 %v4476_v15, %v5071_v33 }
 0xeec   :  { %4238 = vmatmul.mubr.msk.f32.vlgmr.msra.gmra.mrb[36].mxu1 %vm204_vm2, %v2967_v9  ;;  %v3896_v9 = vld [vmem:[%s5238_s10 + $0x38] sm:$0xff] }
 0xeed   :  { %4246 = vmatpush3.msra.mxu1 %v3134_v10  ;;  %4247 = vmatprep.mubr.msk.f32.mxu1 %vm4516_vm1, %v4515_v36  ;;  %v4361_v10 = vpack.c.bf16 %v3896_v9, %v3895_v8 }
 0xeee   :  { %4255 = vmatprep.subr.mxu1 %v4515_v36 }
 0xef0   :  { %4248 = vmatmul.mubr.msk.f32.vlgmr.msra.gmra.mrb[38].mxu1 %vm204_vm2, %v3132_v11 }
 0xef1   :  { %v4478_v13 = vpop.eup %4477  ;;  %4256 = vmatpush3.msra.mxu1 %v3299_v12  ;;  %4257 = vmatprep.mubr.msk.f32.mxu1 %vm4516_vm1, %v4515_v36  ;;  %v4349_v36 = vpack.c.bf16 %v3882_v25, %v3881_v24  ;;  %v3892_v24 = vld [vmem:[%s5237_s9 + $0x1] ss:$0 sm:$0xff] }
 0xef2   :  { %v3297_v17 = vmul.f32 %v4478_v13, %v5076_v49 }
 0xef3   :  { %4350 = vmatprep.subr.bf16.mxu0 %v4349_v36 }
 0xef4   :  { %4258 = vmatmul.mubr.msk.f32.vlgmr.msra.gmra.mrb[40].mxu1 %vm204_vm2, %v3297_v17  ;;  %4352 = vmatpush3.bf16.msra.mxu0 %v4349_v36 }
 0xef5   :  { %4354 = vmatprep.subr.bf16.mxu0 %v4353_v30 }
 0xef8   :  { %4356 = vmatpush3.bf16.msra.mxu0 %v4353_v30  ;;  %v3902_v30 = vld [vmem:[%s5240_s12 + $0x48] sm:$0xff] }
 0xf7e   :  { %v2201_v18 = vpop.f32.mrb[26].mxu1 }
 0xf7f   :  { %v4189_v19 = vpop.f32.mrb[27].mxu1 }
 0xf82   :  { %v2366_v22 = vpop.f32.mrb[28].mxu1 }
 0xf83   :  { %2701 = vrot.lane.b32.xlu0 %v2366_v22, %s5263_s25  ;;  %v4199_v23 = vpop.f32.mrb[29].mxu1  ;;  %v3891_v22 = vld [vmem:[%s5236_s8 + $0x1] ss:$0 sm:$0xff] }
 0xfb3   :  { %v2531_v41 = vpop.f32.mrb[30].mxu1 }
 0xfb4   :  { %2705 = vrot.lane.b32.xlu1 %v2531_v41, %s5264_s1  ;;  %v4209_v26 = vpop.f32.mrb[31].mxu1 }
 0xfb7   :  { %v2696_v29 = vpop.f32.mrb[32].mxu1 }
 0xfb8   :  { %2709 = vrot.lane.b32.xlu1 %v2696_v29, %s5265_s30  ;;  %v4219_v31 = vpop.f32.mrb[33].mxu1  ;;  %v3901_v29 = vld [vmem:[%s5240_s12 + $0x40] sm:$0xff] }
 0xfb9   :  { %v4365_v31 = vpack.c.bf16 %v3902_v30, %v3901_v29  ;;  %v3916_v30 = vld [vmem:[%s5243_s15 + $0x1] ss:$0 sm:$0xff] }
 0xfbb   :  { %v2875_v32 = vpop.f32.mrb[34].mxu1  ;;  %4366 = vmatprep.subr.bf16.mxu0 %v4365_v31 }
 0xfbc   :  { %v4229_v34 = vpop.f32.mrb[35].mxu1 }
 0xfbd   :  { %v3904_v34 = vld [vmem:[%s5240_s12 + $0x58] sm:$0xff] }
 0xfbf   :  { %v3040_v37 = vpop.f32.mrb[36].mxu1 }
 0xfc0   :  { %3375 = vrot.lane.b32.xlu0 %v3040_v37, %s5263_s25  ;;  %v4239_v38 = vpop.f32.mrb[37].mxu1 }
 0xfc1   :  { %v3905_v38 = vld [vmem:[%s5240_s12 + $0x60] sm:$0xff] }
 0xfc3   :  { %v3205_v39 = vpop.f32.mrb[38].mxu1 }
 0xfc4   :  { %3379 = vrot.lane.b32.xlu0 %v3205_v39, %s5264_s1  ;;  %v4249_v20 = vpop.f32.mrb[39].mxu1  ;;  %v3906_v39 = vld [vmem:[%s5240_s12 + $0x68] sm:$0xff] }
 0xfc5   :  { %v4373_v20 = vpack.c.bf16 %v3906_v39, %v3905_v38 }
 0xfc7   :  { %v3370_v42 = vpop.f32.mrb[40].mxu1 }
 0xfc8   :  { %3383 = vrot.lane.b32.xlu1 %v3370_v42, %s5265_s30  ;;  %v4259_v43 = vpop.f32.mrb[41].mxu1  ;;  %v3907_v42 = vld [vmem:[%s5240_s12 + $0x70] sm:$0xff] }
 0xfc9   :  { %v3908_v43 = vld [vmem:[%s5240_s12 + $0x78] sm:$0xff] }
 0xff5   :  { %v2702_v35 = vpop.permute.xlu0 %2701 }
 0xff6   :  { %v2712_v44 = vsel %vm204_vm2, %v2201_v18, %v2702_v35  ;;  %v4377_v35 = vpack.c.bf16 %v3908_v43, %v3907_v42 }
0x1026   :  { %v2706_v33 = vpop.permute.xlu1 %2705 }
0x1027   :  { %v2713_v45 = vsel %vm874_vm3, %v2712_v44, %v2706_v33  ;;  %v3898_v33 = vld [vmem:[%s5239_s11 + $0x1] ss:$0 sm:$0xff] }
0x102a   :  { %v2710_v46 = vpop.permute.xlu1 %2709 }
0x102b   :  { %v2714_v47 = vsel %vm876_vm4, %v2713_v45, %v2710_v46 }
0x102c   :  { %4268 = vmatprep.mubr.msk.f32.mxu0 %vm58_vm0, %v2714_v47 }
0x1032   :  { %v3376_v48 = vpop.permute.xlu0 %3375 }
0x1033   :  { %v3386_v50 = vsel %vm204_vm2, %v2875_v32, %v3376_v48  ;;  %v3903_v32 = vld [vmem:[%s5240_s12 + $0x50] sm:$0xff] }
0x1034   :  { %v4369_v37 = vpack.c.bf16 %v3904_v34, %v3903_v32 }
0x1036   :  { %v3380_v49 = vpop.permute.xlu0 %3379 }
0x1037   :  { %v3387_v51 = vsel %vm874_vm3, %v3386_v50, %v3380_v49 }
0x103a   :  { %v3384_v52 = vpop.permute.xlu1 %3383 }
0x103b   :  { %v3388_v53 = vsel %vm876_vm4, %v3387_v51, %v3384_v52 }
0x103c   :  { %4269 = vmatmul.mubr.msk.f32.vlgmr.msra.gmra.mrb[32].mxu0 %vm58_vm0, %v3388_v53 }
0x103d   :  { %4368 = vmatpush3.bf16.msra.mxu0 %v4365_v31 }
0x103e   :  { %4370 = vmatprep.subr.bf16.mxu0 %v4369_v37 }
0x1041   :  { %4372 = vmatpush3.bf16.msra.mxu0 %v4369_v37 }
0x1042   :  { %4374 = vmatprep.subr.bf16.mxu0 %v4373_v20 }
0x1045   :  { %4376 = vmatpush3.bf16.msra.mxu0 %v4373_v20 }
0x1046   :  { %4378 = vmatprep.subr.bf16.mxu0 %v4377_v35 }
0x1049   :  { %4380 = vmatpush3.bf16.msra.mxu0 %v4377_v35 }
0x110f   :  { %v4270_v55 = vpop.f32.mrb[32].mxu0 }
0x1110   :  { %v3480_v56 = vadd.f32 %v4270_v55, %v3886_v54  ;;  %v3474_v57 = vpop.f32.mrb[33].mxu0 }
0x1111   :  { %v3475_v58 = vadd.f32 %v3886_v54, %v3474_v57 }
0x1112   :  { %v3484_v59 = vadd.f32 %v3480_v56, %v4945_v16 }
0x1113   :  { %v3483_v60 = vadd.f32 %v3475_v58, %v4943_v14  ;;  %v3893_v14 = vld [vmem:[%s5238_s10 + $0x20] sm:$0xff] }
0x1114   :  { %v3492_v21 = vsel %vm58_vm0, %v3484_v59, 0.0  ;;  %v4357_v7 = vpack.c.bf16 %v3894_v6, %v3893_v14 }
0x1115   :  { %3493 = vadd.xlane.f32.xlu1 %v3492_v21  ;;  %v3489_v61 = vsel %vm58_vm0, %v3483_v60, 0.0 }
0x1116   :  { %3490 = vadd.xlane.f32.xlu0 %v3489_v61  ;;  %4358 = vmatprep.subr.bf16.mxu1 %v4357_v7 }
0x1117   :  { %4360 = vmatpush3.bf16.msra.mxu1 %v4357_v7 }
0x1118   :  { %4362 = vmatprep.subr.bf16.mxu1 %v4361_v10 }
0x111b   :  { %4364 = vmatpush3.bf16.msra.mxu1 %v4361_v10 }
0x11a2   :  { %v3494_v63 = vpop.xlane.xlu1 %3493 }
0x11a3   :  { %v3496_v62 = vmul.f32 0.03125, %v3494_v63  ;;  %v3491_v0 = vpop.xlane.xlu0 %3490 }
0x11a4   :  { %v3495_v1 = vmul.f32 0.03125, %v3491_v0 }
0x11a5   :  { %v3498_v2 = vsub.f32 %v3484_v59, %v3496_v62 }
0x11a6   :  { %v3497_v3 = vsub.f32 %v3483_v60, %v3495_v1  ;;  %v3910_v1 = vld [vmem:[%s5241_s13 + $0x1] ss:$0 sm:$0xff] }
0x11a7   :  { %v3500_v5 = vmul.f32 %v3498_v2, %v3498_v2 }
0x11a8   :  { %v3499_v40 = vmul.f32 %v3497_v3, %v3497_v3 }
0x11a9   :  { %v3504_v16 = vsel %vm58_vm0, %v3500_v5, 0.0 }
0x11aa   :  { %v3501_v4 = vsel %vm58_vm0, %v3499_v40, 0.0 }
0x11ab   :  { %3502 = vadd.xlane.f32.xlu0 %v3501_v4 }
0x11af   :  { %3505 = vadd.xlane.f32.xlu0 %v3504_v16 }
0x1238   :  { %v3503_v15 = vpop.xlane.xlu0 %3502 }
0x1239   :  { %v3507_v11 = vmul.f32 0.03125, %v3503_v15 }
0x123b   :  { %v3509_v12 = vadd.f32 1e-12, %v3507_v11 }
0x123c   :  { %v3506_v13 = vpop.xlane.xlu0 %3505 }
0x123d   :  { %4479 = vrsqrt.f32 %v3509_v12  ;;  %v3508_v17 = vmul.f32 0.03125, %v3506_v13 }
0x123f   :  { %v3510_v18 = vadd.f32 1e-12, %v3508_v17 }
0x1241   :  { %4481 = vrsqrt.f32 %v3510_v18 }
0x1247   :  { %v4480_v19 = vpop.eup %4479 }
0x1248   :  { %v3513_v23 = vmul.f32 %v4480_v19, %v3497_v3 }
0x124a   :  { %v3521_v25 = vmul.f32 %v3891_v22, %v3513_v23 }
0x124b   :  { %v4482_v41 = vpop.eup %4481 }
0x124c   :  { %v3514_v36 = vmul.f32 %v4482_v41, %v3498_v2  ;;  %v3529_v26 = vadd.f32 %v3892_v24, %v3521_v25 }
0x124e   :  { %v3522_v27 = vmul.f32 %v3891_v22, %v3514_v36  ;;  %4279 = vmatprep.mubr.msk.f32.mxu1 %vm58_vm0, %v3529_v26 }
0x1250   :  { %v3530_v28 = vadd.f32 %v3892_v24, %v3522_v27 }
0x1252   :  { %4280 = vmatmul.mubr.msk.f32.vlgmr.msra.gmra.mrb[42].mxu1 %vm58_vm0, %v3530_v28 }
0x1325   :  { %v4281_v44 = vpop.f32.mrb[42].mxu1 }
0x1326   :  { %v3622_v45 = vadd.f32 %v4281_v44, %v3898_v33  ;;  %v3616_v46 = vpop.f32.mrb[43].mxu1 }
0x1327   :  { %v3617_v47 = vadd.f32 %v3898_v33, %v3616_v46 }
0x1328   :  { %v3628_v48 = vmul.f32 0.044715, %v3622_v45  ;;  %v3626_v63 = vmul.f32 0.5, %v3622_v45 }
0x1329   :  { %v3627_v49 = vmul.f32 0.044715, %v3617_v47  ;;  %v3625_v21 = vmul.f32 0.5, %v3617_v47 }
0x132a   :  { %v3630_v50 = vmul.f32 %v3628_v48, %v3622_v45 }
0x132b   :  { %v3629_v51 = vmul.f32 %v3627_v49, %v3617_v47 }
0x132c   :  { %v3632_v52 = vmul.f32 %v3630_v50, %v3622_v45 }
0x132d   :  { %v3631_v53 = vmul.f32 %v3629_v51, %v3617_v47 }
0x132e   :  { %v3634_v54 = vadd.f32 %v3632_v52, %v3622_v45 }
0x132f   :  { %v3633_v55 = vadd.f32 %v3631_v53, %v3617_v47 }
0x1330   :  { %v3636_v56 = vmul.f32 0.7978846, %v3634_v54 }
0x1331   :  { %v3635_v57 = vmul.f32 0.7978846, %v3633_v55 }
0x1332   :  { %4483 = vtanh.f32 %v3636_v56 }
0x1333   :  { %4485 = vtanh.f32 %v3635_v57 }
0x133c   :  { %v4484_v58 = vpop.eup %4483 }
0x133d   :  { %v4486_v59 = vpop.eup %4485  ;;  %v3640_v60 = vadd.f32 1.0, %v4484_v58 }
0x133e   :  { %v3639_v61 = vadd.f32 1.0, %v4486_v59 }
0x133f   :  { %v3642_v0 = vmul.f32 %v3640_v60, %v3626_v63 }
0x1340   :  { %v3641_v62 = vmul.f32 %v3639_v61, %v3625_v21 }
0x1342   :  { %4298 = vmatprep.mubr.msk.f32.mxu0 %vm1819_vm5, %v3641_v62 }
0x1343   :  { %4299 = vmatmul.mubr.msk.f32.vlgmr.msra.gmra.mrb[34].mxu0 %vm1819_vm5, %v3642_v0 }
0x1416   :  { %v4300_v2 = vpop.f32.mrb[34].mxu0 }
0x1417   :  { %v3738_v3 = vadd.f32 %v4300_v2, %v3910_v1  ;;  %v3732_v40 = vpop.f32.mrb[35].mxu0 }
0x1418   :  { %v3733_v4 = vadd.f32 %v3910_v1, %v3732_v40 }
0x1419   :  { %v3742_v5 = vadd.f32 %v3738_v3, %v3530_v28 }
0x141a   :  { %v3741_v16 = vadd.f32 %v3733_v4, %v3529_v26  ;;  %v3915_v26 = vld [vmem:[%s5242_s14 + $0x1] ss:$0 sm:$0xff] }
0x141b   :  { %v3750_v14 = vsel %vm58_vm0, %v3742_v5, 0.0 }
0x141c   :  { %3751 = vadd.xlane.f32.xlu1 %v3750_v14  ;;  %v3747_v6 = vsel %vm58_vm0, %v3741_v16, 0.0 }
0x141d   :  { %3748 = vadd.xlane.f32.xlu0 %v3747_v6 }
0x14a9   :  { %v3752_v7 = vpop.xlane.xlu1 %3751 }
0x14aa   :  { %v3754_v8 = vmul.f32 0.03125, %v3752_v7  ;;  %v3749_v9 = vpop.xlane.xlu0 %3748 }
0x14ab   :  { %v3753_v10 = vmul.f32 0.03125, %v3749_v9 }
0x14ac   :  { %v3756_v15 = vsub.f32 %v3742_v5, %v3754_v8 }
0x14ad   :  { %v3755_v11 = vsub.f32 %v3741_v16, %v3753_v10 }
0x14ae   :  { %v3758_v12 = vmul.f32 %v3756_v15, %v3756_v15 }
0x14af   :  { %v3757_v13 = vmul.f32 %v3755_v11, %v3755_v11 }
0x14b0   :  { %v3762_v17 = vsel %vm58_vm0, %v3758_v12, 0.0 }
0x14b1   :  { %3763 = vadd.xlane.f32.xlu1 %v3762_v17  ;;  %v3759_v18 = vsel %vm58_vm0, %v3757_v13, 0.0 }
0x14b2   :  { %3760 = vadd.xlane.f32.xlu0 %v3759_v18 }
0x153e   :  { %v3764_v19 = vpop.xlane.xlu1 %3763 }
0x153f   :  { %v3766_v22 = vmul.f32 0.03125, %v3764_v19  ;;  %v3761_v23 = vpop.xlane.xlu0 %3760 }
0x1540   :  { %v3765_v24 = vmul.f32 0.03125, %v3761_v23 }
0x1541   :  { %v3768_v25 = vadd.f32 1e-12, %v3766_v22 }
0x1542   :  { %v3767_v41 = vadd.f32 1e-12, %v3765_v24 }
0x1543   :  { %4487 = vrsqrt.f32 %v3768_v25 }
0x1544   :  { %4489 = vrsqrt.f32 %v3767_v41 }
0x154d   :  { %v4488_v36 = vpop.eup %4487 }
0x154e   :  { %v4490_v27 = vpop.eup %4489  ;;  %v3772_v28 = vmul.f32 %v4488_v36, %v3756_v15 }
0x154f   :  { %v3771_v29 = vmul.f32 %v4490_v27, %v3755_v11 }
0x1550   :  { %v3780_v31 = vmul.f32 %v3915_v26, %v3772_v28 }
0x1551   :  { %v3779_v32 = vmul.f32 %v3915_v26, %v3771_v29 }
0x1552   :  { %v3788_v34 = vadd.f32 %v3916_v30, %v3780_v31 }
0x1553   :  { %v3787_v37 = vadd.f32 %v3916_v30, %v3779_v32 }
0x1554   :  { %3790 = vst.msk [vmem:[#allocation2 + $0x8] sm:$0xff] %vm58_vm0, %v3788_v34 }
0x1555   :  { %3789 = vst.msk [vmem:[#allocation2] sm:$0xff] %vm58_vm0, %v3787_v37 }
0x1556   :  { %4502 = shalt.err (!%p4499_p4)
}
0x1557   :  { %s4503_s10 = scalar_lea.hbm %s5244_s16, 256 }
0x1558   :  { %p4504_p5 = scmp.ne.s32.totalorder %s5244_s16, %s4503_s10  ;;  %p4507_p6 = scmp.lt.u32.totalorder %s4503_s10, %s5244_s16 }
0x155a   :  { %p4509_p7 = pnand %p4507_p6, %p4504_p5 }
0x155c   :  { %4512 = shalt.err (!%p4509_p7)
}
0x155d   :  { %s4532_s18 = smov 128  }
0x155e   :  { %3802 = dma.vmem_to_hbm [thread:$0]  %s3797_s27, 256, %s5244_s16, [#allocation3], %s4532_s18, %s4532_s18, %s5263_s25  }
0x155f   :  { %4513 = dma.done.wait [#allocation3], 256  }
0x1560   :  { %4514 = vsyncadd [#allocation3], 4294967040 }
0x1561   :  { %3806 = vsyncpa [#allocation3], 1 }

</bundles_post_ra>
